<compile_context>
chip_gen: v5e
topology: v5e:2x2
jax: 0.10.0
libtpu: 0.0.40
codegen_flags: <defaults>
</compile_context>

<pallas_src>
import functools

import jax
import jax.numpy as jnp
from jax import lax
from jax.experimental import pallas as pl
from jax.experimental.pallas import tpu as pltpu


def _round_up(x, m):
    return (x + m - 1) // m * m


def _pick_row_tile(h_out, target):
    """Largest divisor of h_out that is <= target (>= 1)."""
    th = 1
    for d in range(1, min(h_out, max(1, target)) + 1):
        if h_out % d == 0:
            th = d
    return th


# ---------------------------------------------------------------------------
# Fused kernel.  Grid = (N, H_out // TH).
# x_ref    : (H+2, W+2, Cin)      whole spatially-padded image for this batch
#                                 element (fetched once per n, reused over t)
# e_ref    : (TH_in, W+2, Ce_pad) VMEM scratch holding the expanded+BN+ReLU6
#                                 activation for the row tile incl. 1-row halo
# o_ref    : (TH, W_out, Cout)    output row tile
# ---------------------------------------------------------------------------
def _fused_block_kernel(x_ref, w1_ref, s1_ref, b1_ref, wd_ref, sd_ref, bd_ref,
                        w3_ref, s3_ref, b3_ref, *rest,
                        stride, TH, TH_in, H, W, has_expand, residual):
    if stride == 2:
        sel_ref, o_ref, e_ref = rest
    else:
        sel_ref = None
        o_ref, e_ref = rest

    t = pl.program_id(1)
    Wp = W + 2
    Ce_pad = w1_ref.shape[1]
    row0 = t * (TH * stride)        # first padded-input row of this tile's window

    # --- Stage 1: expand 1x1 conv + BN (+ReLU6) into the VMEM scratch -------
    w1 = w1_ref[...]
    s1 = s1_ref[...]
    b1 = b1_ref[...]
    col = lax.broadcasted_iota(jnp.int32, (Wp, Ce_pad), 0)
    col_ok = (col >= 1) & (col <= W)            # inside-image columns (padded coords)
    for j in range(TH_in):
        pr = row0 + j                            # padded row index (dynamic scalar)
        xr = x_ref[pr, :, :]                     # (Wp, Cin)
        er = jnp.dot(xr, w1, preferred_element_type=jnp.float32)
        er = er * s1 + b1
        if has_expand:
            er = jnp.clip(er, 0.0, 6.0)
        # zero the depthwise halo (positions outside the original image)
        ok = col_ok & (pr >= 1) & (pr <= H)
        e_ref[j, :, :] = jnp.where(ok, er, 0.0)

    # --- Stage 2: depthwise 3x3 (stride folded) + BN + ReLU6 + project 1x1 --
    wd = wd_ref[...]
    sd = sd_ref[...]
    bd = bd_ref[...]
    w3 = w3_ref[...]
    s3 = s3_ref[...]
    b3 = b3_ref[...]
    sel = sel_ref[...] if stride == 2 else None
    for oh in range(TH):                         # static, unrolled (TH small)
        r0 = stride * oh
        acc = jnp.zeros((W, Ce_pad), jnp.float32)
        for kh in range(3):
            row = e_ref[r0 + kh]                 # (Wp, Ce_pad)
            for kw in range(3):
                acc = acc + row[kw:kw + W, :] * wd[kh * 3 + kw]
        if stride == 2:
            # pick the even output columns in VMEM (no strided HBM writeback)
            acc = jnp.dot(sel, acc, preferred_element_type=jnp.float32)
        h = jnp.clip(acc * sd + bd, 0.0, 6.0)                      # (W_out, Ce_pad)
        y = jnp.dot(h, w3, preferred_element_type=jnp.float32)     # (W_out, Cout)
        y = y * s3 + b3
        if residual:                             # stride == 1 and Cin == Cout
            xr_full = x_ref[row0 + oh + 1]       # (Wp, Cin)
            y = y + xr_full[1:W + 1, :]
        o_ref[oh, :, :] = y.astype(o_ref.dtype)


def fused_inverted_residual(x_nhwc, w1, s1, b1, wd, sd, bd, w3, s3, b3, *,
                            stride, has_expand, residual, row_tile=8):
    """x_nhwc: (N, H, W, Cin).  Weights are already lane-padded to Ce_pad."""
    N, H, W, Cin = x_nhwc.shape
    Ce_pad = w1.shape[1]
    Cout = w3.shape[1]
    H_out = (H - 1) // stride + 1
    W_out = (W - 1) // stride + 1
    TH = _pick_row_tile(H_out, row_tile)
    T = H_out // TH
    TH_in = (TH - 1) * stride + 3
    Hp, Wp = H + 2, W + 2

    # Only the small un-expanded input is padded on the host; the much larger
    # expanded activation never leaves VMEM.
    x_pad = jnp.pad(x_nhwc, ((0, 0), (1, 1), (1, 1), (0, 0)))

    args = [x_pad, w1, s1, b1, wd, sd, bd, w3, s3, b3]
    in_specs = [
        pl.BlockSpec((None, Hp, Wp, Cin), lambda n, t: (n, 0, 0, 0)),
        pl.BlockSpec((Cin, Ce_pad), lambda n, t: (0, 0)),
        pl.BlockSpec((1, Ce_pad), lambda n, t: (0, 0)),
        pl.BlockSpec((1, Ce_pad), lambda n, t: (0, 0)),
        pl.BlockSpec((9, Ce_pad), lambda n, t: (0, 0)),
        pl.BlockSpec((1, Ce_pad), lambda n, t: (0, 0)),
        pl.BlockSpec((1, Ce_pad), lambda n, t: (0, 0)),
        pl.BlockSpec((Ce_pad, Cout), lambda n, t: (0, 0)),
        pl.BlockSpec((1, Cout), lambda n, t: (0, 0)),
        pl.BlockSpec((1, Cout), lambda n, t: (0, 0)),
    ]
    if stride == 2:
        idx = jnp.arange(W_out)
        sel = jnp.zeros((W_out, W), jnp.float32).at[idx, 2 * idx].set(1.0)
        args.append(sel)
        in_specs.append(pl.BlockSpec((W_out, W), lambda n, t: (0, 0)))

    kernel = functools.partial(
        _fused_block_kernel, stride=stride, TH=TH, TH_in=TH_in, H=H, W=W,
        has_expand=has_expand, residual=residual)

    return pl.pallas_call(
        kernel,
        out_shape=jax.ShapeDtypeStruct((N, H_out, W_out, Cout), x_nhwc.dtype),
        grid_spec=pltpu.PrefetchScalarGridSpec(
            num_scalar_prefetch=0,
            grid=(N, T),
            in_specs=in_specs,
            out_specs=pl.BlockSpec((None, TH, W_out, Cout),
                                   lambda n, t: (n, t, 0, 0)),
            scratch_shapes=[pltpu.VMEM((TH_in, Wp, Ce_pad), jnp.float32)],
        ),
        compiler_params=pltpu.CompilerParams(
            dimension_semantics=("parallel", "parallel"),
            vmem_limit_bytes=48 * 1024 * 1024),
    )(*args)


# ---------------------------------------------------------------------------
# Module equivalent (eval-mode BN folded into per-channel scale/bias)
# ---------------------------------------------------------------------------
def _fold_bn(gamma, beta, mean, var, eps=1e-5):
    scale = gamma / jnp.sqrt(var + eps)
    bias = beta - mean * scale
    return scale, bias


def _bn_params(keys, c):
    gamma = 0.5 + jax.random.uniform(keys[0], (c,), jnp.float32)
    beta = 0.1 * jax.random.normal(keys[1], (c,), jnp.float32)
    mean = 0.1 * jax.random.normal(keys[2], (c,), jnp.float32)
    var = 0.5 + jax.random.uniform(keys[3], (c,), jnp.float32)
    return _fold_bn(gamma, beta, mean, var)


def _pad_lane(a, target):
    pad = target - a.shape[-1]
    if a.ndim == 1:
        return jnp.pad(a, (0, pad))
    return jnp.pad(a, ((0, 0), (0, pad)))


class USInvertedResidualPallas:
    """Forward pass of USInvertedResidual at full width (width_mult == 1),
    where USConv2d/USBatchNorm2d reduce to plain Conv2d/BatchNorm2d."""

    def __init__(self, key, inp, outp, stride, expand_ratio, row_tile=8):
        assert stride in (1, 2)
        self.inp, self.outp = inp, outp
        self.stride, self.expand_ratio = stride, expand_ratio
        self.residual = (stride == 1 and inp == outp)
        self.row_tile = row_tile
        Ce = inp * expand_ratio
        self.Ce = Ce
        Ce_pad = _round_up(Ce, 128)
        self.Ce_pad = Ce_pad
        keys = jax.random.split(key, 16)

        self.has_expand = expand_ratio != 1
        if self.has_expand:
            self.w1 = jax.random.normal(keys[0], (inp, Ce), jnp.float32) * (2.0 / inp) ** 0.5
            self.s1, self.b1 = _bn_params(keys[1:5], Ce)
        else:
            # no expand conv: feed x straight into the depthwise stage
            self.w1 = jnp.eye(inp, dtype=jnp.float32)
            self.s1 = jnp.ones((Ce,), jnp.float32)
            self.b1 = jnp.zeros((Ce,), jnp.float32)

        # depthwise weight stored as (9, C) = (kh*3+kw, channel)
        self.wd = jax.random.normal(keys[5], (9, Ce), jnp.float32) * (2.0 / 9.0) ** 0.5
        self.sd, self.bd = _bn_params(keys[6:10], Ce)
        self.w3 = jax.random.normal(keys[10], (Ce, outp), jnp.float32) * (2.0 / Ce) ** 0.5
        self.s3, self.b3 = _bn_params(keys[11:15], outp)

        # lane-padded (Ce -> Ce_pad) copies used by the fused kernel;
        # padded channels carry zero weight / scale / bias so they stay 0.
        self._w1p = _pad_lane(self.w1, Ce_pad)
        self._s1p = _pad_lane(self.s1, Ce_pad).reshape(1, -1)
        self._b1p = _pad_lane(self.b1, Ce_pad).reshape(1, -1)
        self._wdp = _pad_lane(self.wd, Ce_pad)
        self._sdp = _pad_lane(self.sd, Ce_pad).reshape(1, -1)
        self._bdp = _pad_lane(self.bd, Ce_pad).reshape(1, -1)
        self._w3p = jnp.pad(self.w3, ((0, Ce_pad - Ce), (0, 0)))
        self._s3p = self.s3.reshape(1, -1)
        self._b3p = self.b3.reshape(1, -1)

    def __call__(self, x_nchw):
        N, C, H, W = x_nchw.shape
        assert C == self.inp
        x = jnp.transpose(x_nchw, (0, 2, 3, 1))         # NCHW -> NHWC
        y = fused_inverted_residual(
            x, self._w1p, self._s1p, self._b1p, self._wdp, self._sdp,
            self._bdp, self._w3p, self._s3p, self._b3p,
            stride=self.stride, has_expand=self.has_expand,
            residual=self.residual, row_tile=self.row_tile)
        return jnp.transpose(y, (0, 3, 1, 2))           # NHWC -> NCHW

    # pure-JAX reference (same folded BN params) for numerical verification
    def reference(self, x_nchw):
        x = jnp.transpose(x_nchw, (0, 2, 3, 1))
        h = x
        if self.has_expand:
            h = jnp.einsum("nhwc,cd->nhwd", h, self.w1,
                           precision=lax.Precision.HIGHEST)
            h = jnp.clip(h * self.s1 + self.b1, 0.0, 6.0)
        wd = self.wd.reshape(3, 3, 1, self.Ce)
        h = lax.conv_general_dilated(
            h, wd, window_strides=(self.stride, self.stride),
            padding=((1, 1), (1, 1)),
            dimension_numbers=("NHWC", "HWIO", "NHWC"),
            feature_group_count=self.Ce, precision=lax.Precision.HIGHEST)
        h = jnp.clip(h * self.sd + self.bd, 0.0, 6.0)
        y = jnp.einsum("nhwc,cd->nhwd", h, self.w3,
                       precision=lax.Precision.HIGHEST)
        y = y * self.s3 + self.b3
        if self.residual:
            y = y + x
        return jnp.transpose(y, (0, 3, 1, 2))


if __name__ == "__main__":
    key = jax.random.PRNGKey(0)
    k1, k2, k3, k4 = jax.random.split(key, 4)

    N, inp, H, W = 2, 16, 8, 8

    # Case 1: stride 1, expand_ratio 6, residual active; 2 row tiles (halo
    # crossing tile boundaries is exercised).
    x1 = jax.random.normal(k1, (N, inp, H, W), jnp.float32)
    blk1 = USInvertedResidualPallas(k2, inp, 16, stride=1, expand_ratio=6,
                                    row_tile=4)
    y1 = jax.block_until_ready(blk1(x1))
    assert y1.shape == (N, 16, H, W)
    err1 = float(jnp.max(jnp.abs(y1 - blk1.reference(x1))))
    if err1 > 1e-2:
        raise AssertionError(f"stride-1 mismatch vs reference, max_err={err1}")

    # Case 2: stride 2 (folded inside the kernel), no residual; 2 row tiles.
    x2 = jax.random.normal(k3, (N, inp, H, W), jnp.float32)
    blk2 = USInvertedResidualPallas(k4, inp, 24, stride=2, expand_ratio=6,
                                    row_tile=2)
    y2 = jax.block_until_ready(blk2(x2))
    assert y2.shape == (N, 24, H // 2, W // 2)
    err2 = float(jnp.max(jnp.abs(y2 - blk2.reference(x2))))
    if err2 > 1e-2:
        raise AssertionError(f"stride-2 mismatch vs reference, max_err={err2}")

    print("KERNEL_OK")
</pallas_src>

<mosaic_0001>
module attributes {stable_mosaic.version = 11 : i64} {
  func.func @_fused_block_kernel(%arg0: i32, %arg1: i32, %arg2: memref<1x10x10x16xf32, #tpu.memory_space<vmem>>, %arg3: memref<16x128xf32, #tpu.memory_space<vmem>>, %arg4: memref<1x128xf32, #tpu.memory_space<vmem>>, %arg5: memref<1x128xf32, #tpu.memory_space<vmem>>, %arg6: memref<9x128xf32, #tpu.memory_space<vmem>>, %arg7: memref<1x128xf32, #tpu.memory_space<vmem>>, %arg8: memref<1x128xf32, #tpu.memory_space<vmem>>, %arg9: memref<128x16xf32, #tpu.memory_space<vmem>>, %arg10: memref<1x16xf32, #tpu.memory_space<vmem>>, %arg11: memref<1x16xf32, #tpu.memory_space<vmem>>, %arg12: memref<1x4x8x16xf32, #tpu.memory_space<vmem>>, %arg13: memref<6x10x128xf32, #tpu.memory_space<vmem>>) attributes {dimension_semantics = [#tpu.dimension_semantics<parallel>, #tpu.dimension_semantics<parallel>], iteration_bounds = array<i64: 2, 2>, scalar_prefetch = 0 : i64, scratch_operands = 1 : i64, tpu.core_type = #tpu.core_type<tc>, window_params = [{transform_indices = @transform_0, window_bounds = array<i64: 1, 10, 10, 16>}, {pipeline_mode = #tpu.pipeline_mode<synchronous>, transform_indices = @transform_1, window_bounds = array<i64: 16, 128>}, {pipeline_mode = #tpu.pipeline_mode<synchronous>, transform_indices = @transform_2, window_bounds = array<i64: 1, 128>}, {pipeline_mode = #tpu.pipeline_mode<synchronous>, transform_indices = @transform_3, window_bounds = array<i64: 1, 128>}, {pipeline_mode = #tpu.pipeline_mode<synchronous>, transform_indices = @transform_4, window_bounds = array<i64: 9, 128>}, {pipeline_mode = #tpu.pipeline_mode<synchronous>, transform_indices = @transform_5, window_bounds = array<i64: 1, 128>}, {pipeline_mode = #tpu.pipeline_mode<synchronous>, transform_indices = @transform_6, window_bounds = array<i64: 1, 128>}, {pipeline_mode = #tpu.pipeline_mode<synchronous>, transform_indices = @transform_7, window_bounds = array<i64: 128, 16>}, {pipeline_mode = #tpu.pipeline_mode<synchronous>, transform_indices = @transform_8, window_bounds = array<i64: 1, 16>}, {pipeline_mode = #tpu.pipeline_mode<synchronous>, transform_indices = @transform_9, window_bounds = array<i64: 1, 16>}, {transform_indices = @transform_10, window_bounds = array<i64: 1, 4, 8, 16>}]} {
    %c4_i32 = arith.constant 4 : i32
    %0 = arith.muli %arg1, %c4_i32 : i32
    %c0 = arith.constant 0 : index
    %c0_0 = arith.constant 0 : index
    %1 = vector.load %arg3[%c0, %c0_0] : memref<16x128xf32, #tpu.memory_space<vmem>>, vector<16x128xf32>
    %c0_1 = arith.constant 0 : index
    %c0_2 = arith.constant 0 : index
    %2 = vector.load %arg4[%c0_1, %c0_2] : memref<1x128xf32, #tpu.memory_space<vmem>>, vector<1x128xf32>
    %c0_3 = arith.constant 0 : index
    %c0_4 = arith.constant 0 : index
    %3 = vector.load %arg5[%c0_3, %c0_4] : memref<1x128xf32, #tpu.memory_space<vmem>>, vector<1x128xf32>
    %4 = tpu.iota {dimensions = array<i32: 0>} : vector<10x128xi32>
    %c1_i32 = arith.constant 1 : i32
    %5 = vector.broadcast %c1_i32 : i32 to vector<10x128xi32>
    %6 = arith.cmpi sge, %4, %5 : vector<10x128xi32>
    %c8_i32 = arith.constant 8 : i32
    %7 = vector.broadcast %c8_i32 : i32 to vector<10x128xi32>
    %8 = arith.cmpi sle, %4, %7 : vector<10x128xi32>
    %9 = arith.andi %6, %8 : vector<10x128xi1>
    %c0_i32 = arith.constant 0 : i32
    %10 = arith.addi %0, %c0_i32 : i32
    %c0_5 = arith.constant 0 : index
    %11 = arith.index_cast %10 : i32 to index
    %c0_6 = arith.constant 0 : index
    %c0_7 = arith.constant 0 : index
    %12 = vector.load %arg2[%c0_5, %11, %c0_6, %c0_7] : memref<1x10x10x16xf32, #tpu.memory_space<vmem>>, vector<1x1x10x16xf32>
    %13 = vector.shape_cast %12 : vector<1x1x10x16xf32> to vector<10x16xf32>
    %cst = arith.constant dense<0.000000e+00> : vector<10x128xf32>
    %14 = tpu.matmul %13, %1, %cst {dimension_numbers = #tpu.dot_dimension_numbers<[1], [0], [0], [1], [0, 0, 1, 1], [], []>} : vector<10x16xf32>, vector<16x128xf32>, vector<10x128xf32> -> vector<10x128xf32>
    %15 = vector.broadcast %2 : vector<1x128xf32> to vector<10x128xf32>
    %16 = arith.mulf %14, %15 : vector<10x128xf32>
    %17 = vector.broadcast %3 : vector<1x128xf32> to vector<10x128xf32>
    %18 = arith.addf %16, %17 : vector<10x128xf32>
    %cst_8 = arith.constant 0.000000e+00 : f32
    %cst_9 = arith.constant 6.000000e+00 : f32
    %19 = vector.broadcast %cst_8 : f32 to vector<10x128xf32>
    %20 = arith.maximumf %19, %18 : vector<10x128xf32>
    %21 = vector.broadcast %cst_9 : f32 to vector<10x128xf32>
    %22 = arith.minimumf %21, %20 : vector<10x128xf32>
    %c1_i32_10 = arith.constant 1 : i32
    %23 = arith.cmpi sge, %10, %c1_i32_10 : i32
    %24 = vector.broadcast %23 : i1 to vector<10x128xi1>
    %25 = arith.andi %9, %24 : vector<10x128xi1>
    %c8_i32_11 = arith.constant 8 : i32
    %26 = arith.cmpi sle, %10, %c8_i32_11 : i32
    %27 = vector.broadcast %26 : i1 to vector<10x128xi1>
    %28 = arith.andi %25, %27 : vector<10x128xi1>
    %cst_12 = arith.constant 0.000000e+00 : f32
    %29 = vector.broadcast %cst_12 : f32 to vector<10x128xf32>
    %30 = arith.select %28, %22, %29 : vector<10x128xi1>, vector<10x128xf32>
    %c0_13 = arith.constant 0 : index
    %c0_14 = arith.constant 0 : index
    %c0_15 = arith.constant 0 : index
    %31 = vector.load %arg13[%c0_13, %c0_14, %c0_15] : memref<6x10x128xf32, #tpu.memory_space<vmem>>, vector<1x10x128xf32>
    %32 = vector.shape_cast %31 : vector<1x10x128xf32> to vector<10x128xf32>
    %33 = vector.shape_cast %30 : vector<10x128xf32> to vector<1x10x128xf32>
    tpu.vector_store %arg13[%c0_13, %c0_14, %c0_15], %33 {strides = array<i32>} : memref<6x10x128xf32, #tpu.memory_space<vmem>>, vector<1x10x128xf32>,
    %c1_i32_16 = arith.constant 1 : i32
    %34 = arith.addi %0, %c1_i32_16 : i32
    %c0_17 = arith.constant 0 : index
    %35 = arith.index_cast %34 : i32 to index
    %c0_18 = arith.constant 0 : index
    %c0_19 = arith.constant 0 : index
    %36 = vector.load %arg2[%c0_17, %35, %c0_18, %c0_19] : memref<1x10x10x16xf32, #tpu.memory_space<vmem>>, vector<1x1x10x16xf32>
    %37 = vector.shape_cast %36 : vector<1x1x10x16xf32> to vector<10x16xf32>
    %cst_20 = arith.constant dense<0.000000e+00> : vector<10x128xf32>
    %38 = tpu.matmul %37, %1, %cst_20 {dimension_numbers = #tpu.dot_dimension_numbers<[1], [0], [0], [1], [0, 0, 1, 1], [], []>} : vector<10x16xf32>, vector<16x128xf32>, vector<10x128xf32> -> vector<10x128xf32>
    %39 = vector.broadcast %2 : vector<1x128xf32> to vector<10x128xf32>
    %40 = arith.mulf %38, %39 : vector<10x128xf32>
    %41 = vector.broadcast %3 : vector<1x128xf32> to vector<10x128xf32>
    %42 = arith.addf %40, %41 : vector<10x128xf32>
    %cst_21 = arith.constant 0.000000e+00 : f32
    %cst_22 = arith.constant 6.000000e+00 : f32
    %43 = vector.broadcast %cst_21 : f32 to vector<10x128xf32>
    %44 = arith.maximumf %43, %42 : vector<10x128xf32>
    %45 = vector.broadcast %cst_22 : f32 to vector<10x128xf32>
    %46 = arith.minimumf %45, %44 : vector<10x128xf32>
    %c1_i32_23 = arith.constant 1 : i32
    %47 = arith.cmpi sge, %34, %c1_i32_23 : i32
    %48 = vector.broadcast %47 : i1 to vector<10x128xi1>
    %49 = arith.andi %9, %48 : vector<10x128xi1>
    %c8_i32_24 = arith.constant 8 : i32
    %50 = arith.cmpi sle, %34, %c8_i32_24 : i32
    %51 = vector.broadcast %50 : i1 to vector<10x128xi1>
    %52 = arith.andi %49, %51 : vector<10x128xi1>
    %cst_25 = arith.constant 0.000000e+00 : f32
    %53 = vector.broadcast %cst_25 : f32 to vector<10x128xf32>
    %54 = arith.select %52, %46, %53 : vector<10x128xi1>, vector<10x128xf32>
    %c1 = arith.constant 1 : index
    %c0_26 = arith.constant 0 : index
    %c0_27 = arith.constant 0 : index
    %55 = vector.load %arg13[%c1, %c0_26, %c0_27] : memref<6x10x128xf32, #tpu.memory_space<vmem>>, vector<1x10x128xf32>
    %56 = vector.shape_cast %55 : vector<1x10x128xf32> to vector<10x128xf32>
    %57 = vector.shape_cast %54 : vector<10x128xf32> to vector<1x10x128xf32>
    tpu.vector_store %arg13[%c1, %c0_26, %c0_27], %57 {strides = array<i32>} : memref<6x10x128xf32, #tpu.memory_space<vmem>>, vector<1x10x128xf32>,
    %c2_i32 = arith.constant 2 : i32
    %58 = arith.addi %0, %c2_i32 : i32
    %c0_28 = arith.constant 0 : index
    %59 = arith.index_cast %58 : i32 to index
    %c0_29 = arith.constant 0 : index
    %c0_30 = arith.constant 0 : index
    %60 = vector.load %arg2[%c0_28, %59, %c0_29, %c0_30] : memref<1x10x10x16xf32, #tpu.memory_space<vmem>>, vector<1x1x10x16xf32>
    %61 = vector.shape_cast %60 : vector<1x1x10x16xf32> to vector<10x16xf32>
    %cst_31 = arith.constant dense<0.000000e+00> : vector<10x128xf32>
    %62 = tpu.matmul %61, %1, %cst_31 {dimension_numbers = #tpu.dot_dimension_numbers<[1], [0], [0], [1], [0, 0, 1, 1], [], []>} : vector<10x16xf32>, vector<16x128xf32>, vector<10x128xf32> -> vector<10x128xf32>
    %63 = vector.broadcast %2 : vector<1x128xf32> to vector<10x128xf32>
    %64 = arith.mulf %62, %63 : vector<10x128xf32>
    %65 = vector.broadcast %3 : vector<1x128xf32> to vector<10x128xf32>
    %66 = arith.addf %64, %65 : vector<10x128xf32>
    %cst_32 = arith.constant 0.000000e+00 : f32
    %cst_33 = arith.constant 6.000000e+00 : f32
    %67 = vector.broadcast %cst_32 : f32 to vector<10x128xf32>
    %68 = arith.maximumf %67, %66 : vector<10x128xf32>
    %69 = vector.broadcast %cst_33 : f32 to vector<10x128xf32>
    %70 = arith.minimumf %69, %68 : vector<10x128xf32>
    %c1_i32_34 = arith.constant 1 : i32
    %71 = arith.cmpi sge, %58, %c1_i32_34 : i32
    %72 = vector.broadcast %71 : i1 to vector<10x128xi1>
    %73 = arith.andi %9, %72 : vector<10x128xi1>
    %c8_i32_35 = arith.constant 8 : i32
    %74 = arith.cmpi sle, %58, %c8_i32_35 : i32
    %75 = vector.broadcast %74 : i1 to vector<10x128xi1>
    %76 = arith.andi %73, %75 : vector<10x128xi1>
    %cst_36 = arith.constant 0.000000e+00 : f32
    %77 = vector.broadcast %cst_36 : f32 to vector<10x128xf32>
    %78 = arith.select %76, %70, %77 : vector<10x128xi1>, vector<10x128xf32>
    %c2 = arith.constant 2 : index
    %c0_37 = arith.constant 0 : index
    %c0_38 = arith.constant 0 : index
    %79 = vector.load %arg13[%c2, %c0_37, %c0_38] : memref<6x10x128xf32, #tpu.memory_space<vmem>>, vector<1x10x128xf32>
    %80 = vector.shape_cast %79 : vector<1x10x128xf32> to vector<10x128xf32>
    %81 = vector.shape_cast %78 : vector<10x128xf32> to vector<1x10x128xf32>
    tpu.vector_store %arg13[%c2, %c0_37, %c0_38], %81 {strides = array<i32>} : memref<6x10x128xf32, #tpu.memory_space<vmem>>, vector<1x10x128xf32>,
    %c3_i32 = arith.constant 3 : i32
    %82 = arith.addi %0, %c3_i32 : i32
    %c0_39 = arith.constant 0 : index
    %83 = arith.index_cast %82 : i32 to index
    %c0_40 = arith.constant 0 : index
    %c0_41 = arith.constant 0 : index
    %84 = vector.load %arg2[%c0_39, %83, %c0_40, %c0_41] : memref<1x10x10x16xf32, #tpu.memory_space<vmem>>, vector<1x1x10x16xf32>
    %85 = vector.shape_cast %84 : vector<1x1x10x16xf32> to vector<10x16xf32>
    %cst_42 = arith.constant dense<0.000000e+00> : vector<10x128xf32>
    %86 = tpu.matmul %85, %1, %cst_42 {dimension_numbers = #tpu.dot_dimension_numbers<[1], [0], [0], [1], [0, 0, 1, 1], [], []>} : vector<10x16xf32>, vector<16x128xf32>, vector<10x128xf32> -> vector<10x128xf32>
    %87 = vector.broadcast %2 : vector<1x128xf32> to vector<10x128xf32>
    %88 = arith.mulf %86, %87 : vector<10x128xf32>
    %89 = vector.broadcast %3 : vector<1x128xf32> to vector<10x128xf32>
    %90 = arith.addf %88, %89 : vector<10x128xf32>
    %cst_43 = arith.constant 0.000000e+00 : f32
    %cst_44 = arith.constant 6.000000e+00 : f32
    %91 = vector.broadcast %cst_43 : f32 to vector<10x128xf32>
    %92 = arith.maximumf %91, %90 : vector<10x128xf32>
    %93 = vector.broadcast %cst_44 : f32 to vector<10x128xf32>
    %94 = arith.minimumf %93, %92 : vector<10x128xf32>
    %c1_i32_45 = arith.constant 1 : i32
    %95 = arith.cmpi sge, %82, %c1_i32_45 : i32
    %96 = vector.broadcast %95 : i1 to vector<10x128xi1>
    %97 = arith.andi %9, %96 : vector<10x128xi1>
    %c8_i32_46 = arith.constant 8 : i32
    %98 = arith.cmpi sle, %82, %c8_i32_46 : i32
    %99 = vector.broadcast %98 : i1 to vector<10x128xi1>
    %100 = arith.andi %97, %99 : vector<10x128xi1>
    %cst_47 = arith.constant 0.000000e+00 : f32
    %101 = vector.broadcast %cst_47 : f32 to vector<10x128xf32>
    %102 = arith.select %100, %94, %101 : vector<10x128xi1>, vector<10x128xf32>
    %c3 = arith.constant 3 : index
    %c0_48 = arith.constant 0 : index
    %c0_49 = arith.constant 0 : index
    %103 = vector.load %arg13[%c3, %c0_48, %c0_49] : memref<6x10x128xf32, #tpu.memory_space<vmem>>, vector<1x10x128xf32>
    %104 = vector.shape_cast %103 : vector<1x10x128xf32> to vector<10x128xf32>
    %105 = vector.shape_cast %102 : vector<10x128xf32> to vector<1x10x128xf32>
    tpu.vector_store %arg13[%c3, %c0_48, %c0_49], %105 {strides = array<i32>} : memref<6x10x128xf32, #tpu.memory_space<vmem>>, vector<1x10x128xf32>,
    %c4_i32_50 = arith.constant 4 : i32
    %106 = arith.addi %0, %c4_i32_50 : i32
    %c0_51 = arith.constant 0 : index
    %107 = arith.index_cast %106 : i32 to index
    %c0_52 = arith.constant 0 : index
    %c0_53 = arith.constant 0 : index
    %108 = vector.load %arg2[%c0_51, %107, %c0_52, %c0_53] : memref<1x10x10x16xf32, #tpu.memory_space<vmem>>, vector<1x1x10x16xf32>
    %109 = vector.shape_cast %108 : vector<1x1x10x16xf32> to vector<10x16xf32>
    %cst_54 = arith.constant dense<0.000000e+00> : vector<10x128xf32>
    %110 = tpu.matmul %109, %1, %cst_54 {dimension_numbers = #tpu.dot_dimension_numbers<[1], [0], [0], [1], [0, 0, 1, 1], [], []>} : vector<10x16xf32>, vector<16x128xf32>, vector<10x128xf32> -> vector<10x128xf32>
    %111 = vector.broadcast %2 : vector<1x128xf32> to vector<10x128xf32>
    %112 = arith.mulf %110, %111 : vector<10x128xf32>
    %113 = vector.broadcast %3 : vector<1x128xf32> to vector<10x128xf32>
    %114 = arith.addf %112, %113 : vector<10x128xf32>
    %cst_55 = arith.constant 0.000000e+00 : f32
    %cst_56 = arith.constant 6.000000e+00 : f32
    %115 = vector.broadcast %cst_55 : f32 to vector<10x128xf32>
    %116 = arith.maximumf %115, %114 : vector<10x128xf32>
    %117 = vector.broadcast %cst_56 : f32 to vector<10x128xf32>
    %118 = arith.minimumf %117, %116 : vector<10x128xf32>
    %c1_i32_57 = arith.constant 1 : i32
    %119 = arith.cmpi sge, %106, %c1_i32_57 : i32
    %120 = vector.broadcast %119 : i1 to vector<10x128xi1>
    %121 = arith.andi %9, %120 : vector<10x128xi1>
    %c8_i32_58 = arith.constant 8 : i32
    %122 = arith.cmpi sle, %106, %c8_i32_58 : i32
    %123 = vector.broadcast %122 : i1 to vector<10x128xi1>
    %124 = arith.andi %121, %123 : vector<10x128xi1>
    %cst_59 = arith.constant 0.000000e+00 : f32
    %125 = vector.broadcast %cst_59 : f32 to vector<10x128xf32>
    %126 = arith.select %124, %118, %125 : vector<10x128xi1>, vector<10x128xf32>
    %c4 = arith.constant 4 : index
    %c0_60 = arith.constant 0 : index
    %c0_61 = arith.constant 0 : index
    %127 = vector.load %arg13[%c4, %c0_60, %c0_61] : memref<6x10x128xf32, #tpu.memory_space<vmem>>, vector<1x10x128xf32>
    %128 = vector.shape_cast %127 : vector<1x10x128xf32> to vector<10x128xf32>
    %129 = vector.shape_cast %126 : vector<10x128xf32> to vector<1x10x128xf32>
    tpu.vector_store %arg13[%c4, %c0_60, %c0_61], %129 {strides = array<i32>} : memref<6x10x128xf32, #tpu.memory_space<vmem>>, vector<1x10x128xf32>,
    %c5_i32 = arith.constant 5 : i32
    %130 = arith.addi %0, %c5_i32 : i32
    %c0_62 = arith.constant 0 : index
    %131 = arith.index_cast %130 : i32 to index
    %c0_63 = arith.constant 0 : index
    %c0_64 = arith.constant 0 : index
    %132 = vector.load %arg2[%c0_62, %131, %c0_63, %c0_64] : memref<1x10x10x16xf32, #tpu.memory_space<vmem>>, vector<1x1x10x16xf32>
    %133 = vector.shape_cast %132 : vector<1x1x10x16xf32> to vector<10x16xf32>
    %cst_65 = arith.constant dense<0.000000e+00> : vector<10x128xf32>
    %134 = tpu.matmul %133, %1, %cst_65 {dimension_numbers = #tpu.dot_dimension_numbers<[1], [0], [0], [1], [0, 0, 1, 1], [], []>} : vector<10x16xf32>, vector<16x128xf32>, vector<10x128xf32> -> vector<10x128xf32>
    %135 = vector.broadcast %2 : vector<1x128xf32> to vector<10x128xf32>
    %136 = arith.mulf %134, %135 : vector<10x128xf32>
    %137 = vector.broadcast %3 : vector<1x128xf32> to vector<10x128xf32>
    %138 = arith.addf %136, %137 : vector<10x128xf32>
    %cst_66 = arith.constant 0.000000e+00 : f32
    %cst_67 = arith.constant 6.000000e+00 : f32
    %139 = vector.broadcast %cst_66 : f32 to vector<10x128xf32>
    %140 = arith.maximumf %139, %138 : vector<10x128xf32>
    %141 = vector.broadcast %cst_67 : f32 to vector<10x128xf32>
    %142 = arith.minimumf %141, %140 : vector<10x128xf32>
    %c1_i32_68 = arith.constant 1 : i32
    %143 = arith.cmpi sge, %130, %c1_i32_68 : i32
    %144 = vector.broadcast %143 : i1 to vector<10x128xi1>
    %145 = arith.andi %9, %144 : vector<10x128xi1>
    %c8_i32_69 = arith.constant 8 : i32
    %146 = arith.cmpi sle, %130, %c8_i32_69 : i32
    %147 = vector.broadcast %146 : i1 to vector<10x128xi1>
    %148 = arith.andi %145, %147 : vector<10x128xi1>
    %cst_70 = arith.constant 0.000000e+00 : f32
    %149 = vector.broadcast %cst_70 : f32 to vector<10x128xf32>
    %150 = arith.select %148, %142, %149 : vector<10x128xi1>, vector<10x128xf32>
    %c5 = arith.constant 5 : index
    %c0_71 = arith.constant 0 : index
    %c0_72 = arith.constant 0 : index
    %151 = vector.load %arg13[%c5, %c0_71, %c0_72] : memref<6x10x128xf32, #tpu.memory_space<vmem>>, vector<1x10x128xf32>
    %152 = vector.shape_cast %151 : vector<1x10x128xf32> to vector<10x128xf32>
    %153 = vector.shape_cast %150 : vector<10x128xf32> to vector<1x10x128xf32>
    tpu.vector_store %arg13[%c5, %c0_71, %c0_72], %153 {strides = array<i32>} : memref<6x10x128xf32, #tpu.memory_space<vmem>>, vector<1x10x128xf32>,
    %c0_73 = arith.constant 0 : index
    %c0_74 = arith.constant 0 : index
    %154 = vector.load %arg6[%c0_73, %c0_74] : memref<9x128xf32, #tpu.memory_space<vmem>>, vector<9x128xf32>
    %c0_75 = arith.constant 0 : index
    %c0_76 = arith.constant 0 : index
    %155 = vector.load %arg7[%c0_75, %c0_76] : memref<1x128xf32, #tpu.memory_space<vmem>>, vector<1x128xf32>
    %c0_77 = arith.constant 0 : index
    %c0_78 = arith.constant 0 : index
    %156 = vector.load %arg8[%c0_77, %c0_78] : memref<1x128xf32, #tpu.memory_space<vmem>>, vector<1x128xf32>
    %c0_79 = arith.constant 0 : index
    %c0_80 = arith.constant 0 : index
    %157 = vector.load %arg9[%c0_79, %c0_80] : memref<128x16xf32, #tpu.memory_space<vmem>>, vector<128x16xf32>
    %c0_81 = arith.constant 0 : index
    %c0_82 = arith.constant 0 : index
    %158 = vector.load %arg10[%c0_81, %c0_82] : memref<1x16xf32, #tpu.memory_space<vmem>>, vector<1x16xf32>
    %c0_83 = arith.constant 0 : index
    %c0_84 = arith.constant 0 : index
    %159 = vector.load %arg11[%c0_83, %c0_84] : memref<1x16xf32, #tpu.memory_space<vmem>>, vector<1x16xf32>
    %cst_85 = arith.constant 0.000000e+00 : f32
    %160 = vector.broadcast %cst_85 : f32 to vector<8x128xf32>
    %c0_86 = arith.constant 0 : index
    %c0_87 = arith.constant 0 : index
    %c0_88 = arith.constant 0 : index
    %161 = vector.load %arg13[%c0_86, %c0_87, %c0_88] : memref<6x10x128xf32, #tpu.memory_space<vmem>>, vector<1x10x128xf32>
    %162 = vector.shape_cast %161 : vector<1x10x128xf32> to vector<10x128xf32>
    %163 = vector.extract_strided_slice %162 {offsets = [0, 0], sizes = [8, 128], strides = [1, 1]} : vector<10x128xf32> to vector<8x128xf32>
    %164 = vector.extract_strided_slice %154 {offsets = [0, 0], sizes = [1, 128], strides = [1, 1]} : vector<9x128xf32> to vector<1x128xf32>
    %165 = vector.shape_cast %164 : vector<1x128xf32> to vector<128xf32>
    %166 = vector.shape_cast %165 : vector<128xf32> to vector<1x128xf32>
    %167 = vector.broadcast %166 : vector<1x128xf32> to vector<8x128xf32>
    %168 = arith.mulf %163, %167 : vector<8x128xf32>
    %169 = arith.addf %160, %168 : vector<8x128xf32>
    %170 = vector.extract_strided_slice %162 {offsets = [1, 0], sizes = [8, 128], strides = [1, 1]} : vector<10x128xf32> to vector<8x128xf32>
    %171 = vector.extract_strided_slice %154 {offsets = [1, 0], sizes = [1, 128], strides = [1, 1]} : vector<9x128xf32> to vector<1x128xf32>
    %172 = vector.shape_cast %171 : vector<1x128xf32> to vector<128xf32>
    %173 = vector.shape_cast %172 : vector<128xf32> to vector<1x128xf32>
    %174 = vector.broadcast %173 : vector<1x128xf32> to vector<8x128xf32>
    %175 = arith.mulf %170, %174 : vector<8x128xf32>
    %176 = arith.addf %169, %175 : vector<8x128xf32>
    %177 = vector.extract_strided_slice %162 {offsets = [2, 0], sizes = [8, 128], strides = [1, 1]} : vector<10x128xf32> to vector<8x128xf32>
    %178 = vector.extract_strided_slice %154 {offsets = [2, 0], sizes = [1, 128], strides = [1, 1]} : vector<9x128xf32> to vector<1x128xf32>
    %179 = vector.shape_cast %178 : vector<1x128xf32> to vector<128xf32>
    %180 = vector.shape_cast %179 : vector<128xf32> to vector<1x128xf32>
    %181 = vector.broadcast %180 : vector<1x128xf32> to vector<8x128xf32>
    %182 = arith.mulf %177, %181 : vector<8x128xf32>
    %183 = arith.addf %176, %182 : vector<8x128xf32>
    %c1_89 = arith.constant 1 : index
    %c0_90 = arith.constant 0 : index
    %c0_91 = arith.constant 0 : index
    %184 = vector.load %arg13[%c1_89, %c0_90, %c0_91] : memref<6x10x128xf32, #tpu.memory_space<vmem>>, vector<1x10x128xf32>
    %185 = vector.shape_cast %184 : vector<1x10x128xf32> to vector<10x128xf32>
    %186 = vector.extract_strided_slice %185 {offsets = [0, 0], sizes = [8, 128], strides = [1, 1]} : vector<10x128xf32> to vector<8x128xf32>
    %187 = vector.extract_strided_slice %154 {offsets = [3, 0], sizes = [1, 128], strides = [1, 1]} : vector<9x128xf32> to vector<1x128xf32>
    %188 = vector.shape_cast %187 : vector<1x128xf32> to vector<128xf32>
    %189 = vector.shape_cast %188 : vector<128xf32> to vector<1x128xf32>
    %190 = vector.broadcast %189 : vector<1x128xf32> to vector<8x128xf32>
    %191 = arith.mulf %186, %190 : vector<8x128xf32>
    %192 = arith.addf %183, %191 : vector<8x128xf32>
    %193 = vector.extract_strided_slice %185 {offsets = [1, 0], sizes = [8, 128], strides = [1, 1]} : vector<10x128xf32> to vector<8x128xf32>
    %194 = vector.extract_strided_slice %154 {offsets = [4, 0], sizes = [1, 128], strides = [1, 1]} : vector<9x128xf32> to vector<1x128xf32>
    %195 = vector.shape_cast %194 : vector<1x128xf32> to vector<128xf32>
    %196 = vector.shape_cast %195 : vector<128xf32> to vector<1x128xf32>
    %197 = vector.broadcast %196 : vector<1x128xf32> to vector<8x128xf32>
    %198 = arith.mulf %193, %197 : vector<8x128xf32>
    %199 = arith.addf %192, %198 : vector<8x128xf32>
    %200 = vector.extract_strided_slice %185 {offsets = [2, 0], sizes = [8, 128], strides = [1, 1]} : vector<10x128xf32> to vector<8x128xf32>
    %201 = vector.extract_strided_slice %154 {offsets = [5, 0], sizes = [1, 128], strides = [1, 1]} : vector<9x128xf32> to vector<1x128xf32>
    %202 = vector.shape_cast %201 : vector<1x128xf32> to vector<128xf32>
    %203 = vector.shape_cast %202 : vector<128xf32> to vector<1x128xf32>
    %204 = vector.broadcast %203 : vector<1x128xf32> to vector<8x128xf32>
    %205 = arith.mulf %200, %204 : vector<8x128xf32>
    %206 = arith.addf %199, %205 : vector<8x128xf32>
    %c2_92 = arith.constant 2 : index
    %c0_93 = arith.constant 0 : index
    %c0_94 = arith.constant 0 : index
    %207 = vector.load %arg13[%c2_92, %c0_93, %c0_94] : memref<6x10x128xf32, #tpu.memory_space<vmem>>, vector<1x10x128xf32>
    %208 = vector.shape_cast %207 : vector<1x10x128xf32> to vector<10x128xf32>
    %209 = vector.extract_strided_slice %208 {offsets = [0, 0], sizes = [8, 128], strides = [1, 1]} : vector<10x128xf32> to vector<8x128xf32>
    %210 = vector.extract_strided_slice %154 {offsets = [6, 0], sizes = [1, 128], strides = [1, 1]} : vector<9x128xf32> to vector<1x128xf32>
    %211 = vector.shape_cast %210 : vector<1x128xf32> to vector<128xf32>
    %212 = vector.shape_cast %211 : vector<128xf32> to vector<1x128xf32>
    %213 = vector.broadcast %212 : vector<1x128xf32> to vector<8x128xf32>
    %214 = arith.mulf %209, %213 : vector<8x128xf32>
    %215 = arith.addf %206, %214 : vector<8x128xf32>
    %216 = vector.extract_strided_slice %208 {offsets = [1, 0], sizes = [8, 128], strides = [1, 1]} : vector<10x128xf32> to vector<8x128xf32>
    %217 = vector.extract_strided_slice %154 {offsets = [7, 0], sizes = [1, 128], strides = [1, 1]} : vector<9x128xf32> to vector<1x128xf32>
    %218 = vector.shape_cast %217 : vector<1x128xf32> to vector<128xf32>
    %219 = vector.shape_cast %218 : vector<128xf32> to vector<1x128xf32>
    %220 = vector.broadcast %219 : vector<1x128xf32> to vector<8x128xf32>
    %221 = arith.mulf %216, %220 : vector<8x128xf32>
    %222 = arith.addf %215, %221 : vector<8x128xf32>
    %223 = vector.extract_strided_slice %208 {offsets = [2, 0], sizes = [8, 128], strides = [1, 1]} : vector<10x128xf32> to vector<8x128xf32>
    %224 = vector.extract_strided_slice %154 {offsets = [8, 0], sizes = [1, 128], strides = [1, 1]} : vector<9x128xf32> to vector<1x128xf32>
    %225 = vector.shape_cast %224 : vector<1x128xf32> to vector<128xf32>
    %226 = vector.shape_cast %225 : vector<128xf32> to vector<1x128xf32>
    %227 = vector.broadcast %226 : vector<1x128xf32> to vector<8x128xf32>
    %228 = arith.mulf %223, %227 : vector<8x128xf32>
    %229 = arith.addf %222, %228 : vector<8x128xf32>
    %230 = vector.broadcast %155 : vector<1x128xf32> to vector<8x128xf32>
    %231 = arith.mulf %229, %230 : vector<8x128xf32>
    %232 = vector.broadcast %156 : vector<1x128xf32> to vector<8x128xf32>
    %233 = arith.addf %231, %232 : vector<8x128xf32>
    %cst_95 = arith.constant 0.000000e+00 : f32
    %cst_96 = arith.constant 6.000000e+00 : f32
    %234 = vector.broadcast %cst_95 : f32 to vector<8x128xf32>
    %235 = arith.maximumf %234, %233 : vector<8x128xf32>
    %236 = vector.broadcast %cst_96 : f32 to vector<8x128xf32>
    %237 = arith.minimumf %236, %235 : vector<8x128xf32>
    %cst_97 = arith.constant dense<0.000000e+00> : vector<8x16xf32>
    %238 = tpu.matmul %237, %157, %cst_97 {dimension_numbers = #tpu.dot_dimension_numbers<[1], [0], [0], [1], [0, 0, 1, 1], [], []>} : vector<8x128xf32>, vector<128x16xf32>, vector<8x16xf32> -> vector<8x16xf32>
    %239 = vector.broadcast %158 : vector<1x16xf32> to vector<8x16xf32>
    %240 = arith.mulf %238, %239 : vector<8x16xf32>
    %241 = vector.broadcast %159 : vector<1x16xf32> to vector<8x16xf32>
    %242 = arith.addf %240, %241 : vector<8x16xf32>
    %c0_i32_98 = arith.constant 0 : i32
    %243 = arith.addi %0, %c0_i32_98 : i32
    %c1_i32_99 = arith.constant 1 : i32
    %244 = arith.addi %243, %c1_i32_99 : i32
    %c0_100 = arith.constant 0 : index
    %245 = arith.index_cast %244 : i32 to index
    %c0_101 = arith.constant 0 : index
    %c0_102 = arith.constant 0 : index
    %246 = vector.load %arg2[%c0_100, %245, %c0_101, %c0_102] : memref<1x10x10x16xf32, #tpu.memory_space<vmem>>, vector<1x1x10x16xf32>
    %247 = vector.shape_cast %246 : vector<1x1x10x16xf32> to vector<10x16xf32>
    %248 = vector.extract_strided_slice %247 {offsets = [1, 0], sizes = [8, 16], strides = [1, 1]} : vector<10x16xf32> to vector<8x16xf32>
    %249 = arith.addf %242, %248 : vector<8x16xf32>
    %c0_103 = arith.constant 0 : index
    %c0_104 = arith.constant 0 : index
    %c0_105 = arith.constant 0 : index
    %c0_106 = arith.constant 0 : index
    %250 = vector.load %arg12[%c0_103, %c0_104, %c0_105, %c0_106] : memref<1x4x8x16xf32, #tpu.memory_space<vmem>>, vector<1x1x8x16xf32>
    %251 = vector.shape_cast %250 : vector<1x1x8x16xf32> to vector<8x16xf32>
    %252 = vector.shape_cast %249 : vector<8x16xf32> to vector<1x1x8x16xf32>
    tpu.vector_store %arg12[%c0_103, %c0_104, %c0_105, %c0_106], %252 {strides = array<i32>} : memref<1x4x8x16xf32, #tpu.memory_space<vmem>>, vector<1x1x8x16xf32>,
    %cst_107 = arith.constant 0.000000e+00 : f32
    %253 = vector.broadcast %cst_107 : f32 to vector<8x128xf32>
    %c1_108 = arith.constant 1 : index
    %c0_109 = arith.constant 0 : index
    %c0_110 = arith.constant 0 : index
    %254 = vector.load %arg13[%c1_108, %c0_109, %c0_110] : memref<6x10x128xf32, #tpu.memory_space<vmem>>, vector<1x10x128xf32>
    %255 = vector.shape_cast %254 : vector<1x10x128xf32> to vector<10x128xf32>
    %256 = vector.extract_strided_slice %255 {offsets = [0, 0], sizes = [8, 128], strides = [1, 1]} : vector<10x128xf32> to vector<8x128xf32>
    %257 = vector.extract_strided_slice %154 {offsets = [0, 0], sizes = [1, 128], strides = [1, 1]} : vector<9x128xf32> to vector<1x128xf32>
    %258 = vector.shape_cast %257 : vector<1x128xf32> to vector<128xf32>
    %259 = vector.shape_cast %258 : vector<128xf32> to vector<1x128xf32>
    %260 = vector.broadcast %259 : vector<1x128xf32> to vector<8x128xf32>
    %261 = arith.mulf %256, %260 : vector<8x128xf32>
    %262 = arith.addf %253, %261 : vector<8x128xf32>
    %263 = vector.extract_strided_slice %255 {offsets = [1, 0], sizes = [8, 128], strides = [1, 1]} : vector<10x128xf32> to vector<8x128xf32>
    %264 = vector.extract_strided_slice %154 {offsets = [1, 0], sizes = [1, 128], strides = [1, 1]} : vector<9x128xf32> to vector<1x128xf32>
    %265 = vector.shape_cast %264 : vector<1x128xf32> to vector<128xf32>
    %266 = vector.shape_cast %265 : vector<128xf32> to vector<1x128xf32>
    %267 = vector.broadcast %266 : vector<1x128xf32> to vector<8x128xf32>
    %268 = arith.mulf %263, %267 : vector<8x128xf32>
    %269 = arith.addf %262, %268 : vector<8x128xf32>
    %270 = vector.extract_strided_slice %255 {offsets = [2, 0], sizes = [8, 128], strides = [1, 1]} : vector<10x128xf32> to vector<8x128xf32>
    %271 = vector.extract_strided_slice %154 {offsets = [2, 0], sizes = [1, 128], strides = [1, 1]} : vector<9x128xf32> to vector<1x128xf32>
    %272 = vector.shape_cast %271 : vector<1x128xf32> to vector<128xf32>
    %273 = vector.shape_cast %272 : vector<128xf32> to vector<1x128xf32>
    %274 = vector.broadcast %273 : vector<1x128xf32> to vector<8x128xf32>
    %275 = arith.mulf %270, %274 : vector<8x128xf32>
    %276 = arith.addf %269, %275 : vector<8x128xf32>
    %c2_111 = arith.constant 2 : index
    %c0_112 = arith.constant 0 : index
    %c0_113 = arith.constant 0 : index
    %277 = vector.load %arg13[%c2_111, %c0_112, %c0_113] : memref<6x10x128xf32, #tpu.memory_space<vmem>>, vector<1x10x128xf32>
    %278 = vector.shape_cast %277 : vector<1x10x128xf32> to vector<10x128xf32>
    %279 = vector.extract_strided_slice %278 {offsets = [0, 0], sizes = [8, 128], strides = [1, 1]} : vector<10x128xf32> to vector<8x128xf32>
    %280 = vector.extract_strided_slice %154 {offsets = [3, 0], sizes = [1, 128], strides = [1, 1]} : vector<9x128xf32> to vector<1x128xf32>
    %281 = vector.shape_cast %280 : vector<1x128xf32> to vector<128xf32>
    %282 = vector.shape_cast %281 : vector<128xf32> to vector<1x128xf32>
    %283 = vector.broadcast %282 : vector<1x128xf32> to vector<8x128xf32>
    %284 = arith.mulf %279, %283 : vector<8x128xf32>
    %285 = arith.addf %276, %284 : vector<8x128xf32>
    %286 = vector.extract_strided_slice %278 {offsets = [1, 0], sizes = [8, 128], strides = [1, 1]} : vector<10x128xf32> to vector<8x128xf32>
    %287 = vector.extract_strided_slice %154 {offsets = [4, 0], sizes = [1, 128], strides = [1, 1]} : vector<9x128xf32> to vector<1x128xf32>
    %288 = vector.shape_cast %287 : vector<1x128xf32> to vector<128xf32>
    %289 = vector.shape_cast %288 : vector<128xf32> to vector<1x128xf32>
    %290 = vector.broadcast %289 : vector<1x128xf32> to vector<8x128xf32>
    %291 = arith.mulf %286, %290 : vector<8x128xf32>
    %292 = arith.addf %285, %291 : vector<8x128xf32>
    %293 = vector.extract_strided_slice %278 {offsets = [2, 0], sizes = [8, 128], strides = [1, 1]} : vector<10x128xf32> to vector<8x128xf32>
    %294 = vector.extract_strided_slice %154 {offsets = [5, 0], sizes = [1, 128], strides = [1, 1]} : vector<9x128xf32> to vector<1x128xf32>
    %295 = vector.shape_cast %294 : vector<1x128xf32> to vector<128xf32>
    %296 = vector.shape_cast %295 : vector<128xf32> to vector<1x128xf32>
    %297 = vector.broadcast %296 : vector<1x128xf32> to vector<8x128xf32>
    %298 = arith.mulf %293, %297 : vector<8x128xf32>
    %299 = arith.addf %292, %298 : vector<8x128xf32>
    %c3_114 = arith.constant 3 : index
    %c0_115 = arith.constant 0 : index
    %c0_116 = arith.constant 0 : index
    %300 = vector.load %arg13[%c3_114, %c0_115, %c0_116] : memref<6x10x128xf32, #tpu.memory_space<vmem>>, vector<1x10x128xf32>
    %301 = vector.shape_cast %300 : vector<1x10x128xf32> to vector<10x128xf32>
    %302 = vector.extract_strided_slice %301 {offsets = [0, 0], sizes = [8, 128], strides = [1, 1]} : vector<10x128xf32> to vector<8x128xf32>
    %303 = vector.extract_strided_slice %154 {offsets = [6, 0], sizes = [1, 128], strides = [1, 1]} : vector<9x128xf32> to vector<1x128xf32>
    %304 = vector.shape_cast %303 : vector<1x128xf32> to vector<128xf32>
    %305 = vector.shape_cast %304 : vector<128xf32> to vector<1x128xf32>
    %306 = vector.broadcast %305 : vector<1x128xf32> to vector<8x128xf32>
    %307 = arith.mulf %302, %306 : vector<8x128xf32>
    %308 = arith.addf %299, %307 : vector<8x128xf32>
    %309 = vector.extract_strided_slice %301 {offsets = [1, 0], sizes = [8, 128], strides = [1, 1]} : vector<10x128xf32> to vector<8x128xf32>
    %310 = vector.extract_strided_slice %154 {offsets = [7, 0], sizes = [1, 128], strides = [1, 1]} : vector<9x128xf32> to vector<1x128xf32>
    %311 = vector.shape_cast %310 : vector<1x128xf32> to vector<128xf32>
    %312 = vector.shape_cast %311 : vector<128xf32> to vector<1x128xf32>
    %313 = vector.broadcast %312 : vector<1x128xf32> to vector<8x128xf32>
    %314 = arith.mulf %309, %313 : vector<8x128xf32>
    %315 = arith.addf %308, %314 : vector<8x128xf32>
    %316 = vector.extract_strided_slice %301 {offsets = [2, 0], sizes = [8, 128], strides = [1, 1]} : vector<10x128xf32> to vector<8x128xf32>
    %317 = vector.extract_strided_slice %154 {offsets = [8, 0], sizes = [1, 128], strides = [1, 1]} : vector<9x128xf32> to vector<1x128xf32>
    %318 = vector.shape_cast %317 : vector<1x128xf32> to vector<128xf32>
    %319 = vector.shape_cast %318 : vector<128xf32> to vector<1x128xf32>
    %320 = vector.broadcast %319 : vector<1x128xf32> to vector<8x128xf32>
    %321 = arith.mulf %316, %320 : vector<8x128xf32>
    %322 = arith.addf %315, %321 : vector<8x128xf32>
    %323 = vector.broadcast %155 : vector<1x128xf32> to vector<8x128xf32>
    %324 = arith.mulf %322, %323 : vector<8x128xf32>
    %325 = vector.broadcast %156 : vector<1x128xf32> to vector<8x128xf32>
    %326 = arith.addf %324, %325 : vector<8x128xf32>
    %cst_117 = arith.constant 0.000000e+00 : f32
    %cst_118 = arith.constant 6.000000e+00 : f32
    %327 = vector.broadcast %cst_117 : f32 to vector<8x128xf32>
    %328 = arith.maximumf %327, %326 : vector<8x128xf32>
    %329 = vector.broadcast %cst_118 : f32 to vector<8x128xf32>
    %330 = arith.minimumf %329, %328 : vector<8x128xf32>
    %cst_119 = arith.constant dense<0.000000e+00> : vector<8x16xf32>
    %331 = tpu.matmul %330, %157, %cst_119 {dimension_numbers = #tpu.dot_dimension_numbers<[1], [0], [0], [1], [0, 0, 1, 1], [], []>} : vector<8x128xf32>, vector<128x16xf32>, vector<8x16xf32> -> vector<8x16xf32>
    %332 = vector.broadcast %158 : vector<1x16xf32> to vector<8x16xf32>
    %333 = arith.mulf %331, %332 : vector<8x16xf32>
    %334 = vector.broadcast %159 : vector<1x16xf32> to vector<8x16xf32>
    %335 = arith.addf %333, %334 : vector<8x16xf32>
    %c1_i32_120 = arith.constant 1 : i32
    %336 = arith.addi %0, %c1_i32_120 : i32
    %c1_i32_121 = arith.constant 1 : i32
    %337 = arith.addi %336, %c1_i32_121 : i32
    %c0_122 = arith.constant 0 : index
    %338 = arith.index_cast %337 : i32 to index
    %c0_123 = arith.constant 0 : index
    %c0_124 = arith.constant 0 : index
    %339 = vector.load %arg2[%c0_122, %338, %c0_123, %c0_124] : memref<1x10x10x16xf32, #tpu.memory_space<vmem>>, vector<1x1x10x16xf32>
    %340 = vector.shape_cast %339 : vector<1x1x10x16xf32> to vector<10x16xf32>
    %341 = vector.extract_strided_slice %340 {offsets = [1, 0], sizes = [8, 16], strides = [1, 1]} : vector<10x16xf32> to vector<8x16xf32>
    %342 = arith.addf %335, %341 : vector<8x16xf32>
    %c0_125 = arith.constant 0 : index
    %c1_126 = arith.constant 1 : index
    %c0_127 = arith.constant 0 : index
    %c0_128 = arith.constant 0 : index
    %343 = vector.load %arg12[%c0_125, %c1_126, %c0_127, %c0_128] : memref<1x4x8x16xf32, #tpu.memory_space<vmem>>, vector<1x1x8x16xf32>
    %344 = vector.shape_cast %343 : vector<1x1x8x16xf32> to vector<8x16xf32>
    %345 = vector.shape_cast %342 : vector<8x16xf32> to vector<1x1x8x16xf32>
    tpu.vector_store %arg12[%c0_125, %c1_126, %c0_127, %c0_128], %345 {strides = array<i32>} : memref<1x4x8x16xf32, #tpu.memory_space<vmem>>, vector<1x1x8x16xf32>,
    %cst_129 = arith.constant 0.000000e+00 : f32
    %346 = vector.broadcast %cst_129 : f32 to vector<8x128xf32>
    %c2_130 = arith.constant 2 : index
    %c0_131 = arith.constant 0 : index
    %c0_132 = arith.constant 0 : index
    %347 = vector.load %arg13[%c2_130, %c0_131, %c0_132] : memref<6x10x128xf32, #tpu.memory_space<vmem>>, vector<1x10x128xf32>
    %348 = vector.shape_cast %347 : vector<1x10x128xf32> to vector<10x128xf32>
    %349 = vector.extract_strided_slice %348 {offsets = [0, 0], sizes = [8, 128], strides = [1, 1]} : vector<10x128xf32> to vector<8x128xf32>
    %350 = vector.extract_strided_slice %154 {offsets = [0, 0], sizes = [1, 128], strides = [1, 1]} : vector<9x128xf32> to vector<1x128xf32>
    %351 = vector.shape_cast %350 : vector<1x128xf32> to vector<128xf32>
    %352 = vector.shape_cast %351 : vector<128xf32> to vector<1x128xf32>
    %353 = vector.broadcast %352 : vector<1x128xf32> to vector<8x128xf32>
    %354 = arith.mulf %349, %353 : vector<8x128xf32>
    %355 = arith.addf %346, %354 : vector<8x128xf32>
    %356 = vector.extract_strided_slice %348 {offsets = [1, 0], sizes = [8, 128], strides = [1, 1]} : vector<10x128xf32> to vector<8x128xf32>
    %357 = vector.extract_strided_slice %154 {offsets = [1, 0], sizes = [1, 128], strides = [1, 1]} : vector<9x128xf32> to vector<1x128xf32>
    %358 = vector.shape_cast %357 : vector<1x128xf32> to vector<128xf32>
    %359 = vector.shape_cast %358 : vector<128xf32> to vector<1x128xf32>
    %360 = vector.broadcast %359 : vector<1x128xf32> to vector<8x128xf32>
    %361 = arith.mulf %356, %360 : vector<8x128xf32>
    %362 = arith.addf %355, %361 : vector<8x128xf32>
    %363 = vector.extract_strided_slice %348 {offsets = [2, 0], sizes = [8, 128], strides = [1, 1]} : vector<10x128xf32> to vector<8x128xf32>
    %364 = vector.extract_strided_slice %154 {offsets = [2, 0], sizes = [1, 128], strides = [1, 1]} : vector<9x128xf32> to vector<1x128xf32>
    %365 = vector.shape_cast %364 : vector<1x128xf32> to vector<128xf32>
    %366 = vector.shape_cast %365 : vector<128xf32> to vector<1x128xf32>
    %367 = vector.broadcast %366 : vector<1x128xf32> to vector<8x128xf32>
    %368 = arith.mulf %363, %367 : vector<8x128xf32>
    %369 = arith.addf %362, %368 : vector<8x128xf32>
    %c3_133 = arith.constant 3 : index
    %c0_134 = arith.constant 0 : index
    %c0_135 = arith.constant 0 : index
    %370 = vector.load %arg13[%c3_133, %c0_134, %c0_135] : memref<6x10x128xf32, #tpu.memory_space<vmem>>, vector<1x10x128xf32>
    %371 = vector.shape_cast %370 : vector<1x10x128xf32> to vector<10x128xf32>
    %372 = vector.extract_strided_slice %371 {offsets = [0, 0], sizes = [8, 128], strides = [1, 1]} : vector<10x128xf32> to vector<8x128xf32>
    %373 = vector.extract_strided_slice %154 {offsets = [3, 0], sizes = [1, 128], strides = [1, 1]} : vector<9x128xf32> to vector<1x128xf32>
    %374 = vector.shape_cast %373 : vector<1x128xf32> to vector<128xf32>
    %375 = vector.shape_cast %374 : vector<128xf32> to vector<1x128xf32>
    %376 = vector.broadcast %375 : vector<1x128xf32> to vector<8x128xf32>
    %377 = arith.mulf %372, %376 : vector<8x128xf32>
    %378 = arith.addf %369, %377 : vector<8x128xf32>
    %379 = vector.extract_strided_slice %371 {offsets = [1, 0], sizes = [8, 128], strides = [1, 1]} : vector<10x128xf32> to vector<8x128xf32>
    %380 = vector.extract_strided_slice %154 {offsets = [4, 0], sizes = [1, 128], strides = [1, 1]} : vector<9x128xf32> to vector<1x128xf32>
    %381 = vector.shape_cast %380 : vector<1x128xf32> to vector<128xf32>
    %382 = vector.shape_cast %381 : vector<128xf32> to vector<1x128xf32>
    %383 = vector.broadcast %382 : vector<1x128xf32> to vector<8x128xf32>
    %384 = arith.mulf %379, %383 : vector<8x128xf32>
    %385 = arith.addf %378, %384 : vector<8x128xf32>
    %386 = vector.extract_strided_slice %371 {offsets = [2, 0], sizes = [8, 128], strides = [1, 1]} : vector<10x128xf32> to vector<8x128xf32>
    %387 = vector.extract_strided_slice %154 {offsets = [5, 0], sizes = [1, 128], strides = [1, 1]} : vector<9x128xf32> to vector<1x128xf32>
    %388 = vector.shape_cast %387 : vector<1x128xf32> to vector<128xf32>
    %389 = vector.shape_cast %388 : vector<128xf32> to vector<1x128xf32>
    %390 = vector.broadcast %389 : vector<1x128xf32> to vector<8x128xf32>
    %391 = arith.mulf %386, %390 : vector<8x128xf32>
    %392 = arith.addf %385, %391 : vector<8x128xf32>
    %c4_136 = arith.constant 4 : index
    %c0_137 = arith.constant 0 : index
    %c0_138 = arith.constant 0 : index
    %393 = vector.load %arg13[%c4_136, %c0_137, %c0_138] : memref<6x10x128xf32, #tpu.memory_space<vmem>>, vector<1x10x128xf32>
    %394 = vector.shape_cast %393 : vector<1x10x128xf32> to vector<10x128xf32>
    %395 = vector.extract_strided_slice %394 {offsets = [0, 0], sizes = [8, 128], strides = [1, 1]} : vector<10x128xf32> to vector<8x128xf32>
    %396 = vector.extract_strided_slice %154 {offsets = [6, 0], sizes = [1, 128], strides = [1, 1]} : vector<9x128xf32> to vector<1x128xf32>
    %397 = vector.shape_cast %396 : vector<1x128xf32> to vector<128xf32>
    %398 = vector.shape_cast %397 : vector<128xf32> to vector<1x128xf32>
    %399 = vector.broadcast %398 : vector<1x128xf32> to vector<8x128xf32>
    %400 = arith.mulf %395, %399 : vector<8x128xf32>
    %401 = arith.addf %392, %400 : vector<8x128xf32>
    %402 = vector.extract_strided_slice %394 {offsets = [1, 0], sizes = [8, 128], strides = [1, 1]} : vector<10x128xf32> to vector<8x128xf32>
    %403 = vector.extract_strided_slice %154 {offsets = [7, 0], sizes = [1, 128], strides = [1, 1]} : vector<9x128xf32> to vector<1x128xf32>
    %404 = vector.shape_cast %403 : vector<1x128xf32> to vector<128xf32>
    %405 = vector.shape_cast %404 : vector<128xf32> to vector<1x128xf32>
    %406 = vector.broadcast %405 : vector<1x128xf32> to vector<8x128xf32>
    %407 = arith.mulf %402, %406 : vector<8x128xf32>
    %408 = arith.addf %401, %407 : vector<8x128xf32>
    %409 = vector.extract_strided_slice %394 {offsets = [2, 0], sizes = [8, 128], strides = [1, 1]} : vector<10x128xf32> to vector<8x128xf32>
    %410 = vector.extract_strided_slice %154 {offsets = [8, 0], sizes = [1, 128], strides = [1, 1]} : vector<9x128xf32> to vector<1x128xf32>
    %411 = vector.shape_cast %410 : vector<1x128xf32> to vector<128xf32>
    %412 = vector.shape_cast %411 : vector<128xf32> to vector<1x128xf32>
    %413 = vector.broadcast %412 : vector<1x128xf32> to vector<8x128xf32>
    %414 = arith.mulf %409, %413 : vector<8x128xf32>
    %415 = arith.addf %408, %414 : vector<8x128xf32>
    %416 = vector.broadcast %155 : vector<1x128xf32> to vector<8x128xf32>
    %417 = arith.mulf %415, %416 : vector<8x128xf32>
    %418 = vector.broadcast %156 : vector<1x128xf32> to vector<8x128xf32>
    %419 = arith.addf %417, %418 : vector<8x128xf32>
    %cst_139 = arith.constant 0.000000e+00 : f32
    %cst_140 = arith.constant 6.000000e+00 : f32
    %420 = vector.broadcast %cst_139 : f32 to vector<8x128xf32>
    %421 = arith.maximumf %420, %419 : vector<8x128xf32>
    %422 = vector.broadcast %cst_140 : f32 to vector<8x128xf32>
    %423 = arith.minimumf %422, %421 : vector<8x128xf32>
    %cst_141 = arith.constant dense<0.000000e+00> : vector<8x16xf32>
    %424 = tpu.matmul %423, %157, %cst_141 {dimension_numbers = #tpu.dot_dimension_numbers<[1], [0], [0], [1], [0, 0, 1, 1], [], []>} : vector<8x128xf32>, vector<128x16xf32>, vector<8x16xf32> -> vector<8x16xf32>
    %425 = vector.broadcast %158 : vector<1x16xf32> to vector<8x16xf32>
    %426 = arith.mulf %424, %425 : vector<8x16xf32>
    %427 = vector.broadcast %159 : vector<1x16xf32> to vector<8x16xf32>
    %428 = arith.addf %426, %427 : vector<8x16xf32>
    %c2_i32_142 = arith.constant 2 : i32
    %429 = arith.addi %0, %c2_i32_142 : i32
    %c1_i32_143 = arith.constant 1 : i32
    %430 = arith.addi %429, %c1_i32_143 : i32
    %c0_144 = arith.constant 0 : index
    %431 = arith.index_cast %430 : i32 to index
    %c0_145 = arith.constant 0 : index
    %c0_146 = arith.constant 0 : index
    %432 = vector.load %arg2[%c0_144, %431, %c0_145, %c0_146] : memref<1x10x10x16xf32, #tpu.memory_space<vmem>>, vector<1x1x10x16xf32>
    %433 = vector.shape_cast %432 : vector<1x1x10x16xf32> to vector<10x16xf32>
    %434 = vector.extract_strided_slice %433 {offsets = [1, 0], sizes = [8, 16], strides = [1, 1]} : vector<10x16xf32> to vector<8x16xf32>
    %435 = arith.addf %428, %434 : vector<8x16xf32>
    %c0_147 = arith.constant 0 : index
    %c2_148 = arith.constant 2 : index
    %c0_149 = arith.constant 0 : index
    %c0_150 = arith.constant 0 : index
    %436 = vector.load %arg12[%c0_147, %c2_148, %c0_149, %c0_150] : memref<1x4x8x16xf32, #tpu.memory_space<vmem>>, vector<1x1x8x16xf32>
    %437 = vector.shape_cast %436 : vector<1x1x8x16xf32> to vector<8x16xf32>
    %438 = vector.shape_cast %435 : vector<8x16xf32> to vector<1x1x8x16xf32>
    tpu.vector_store %arg12[%c0_147, %c2_148, %c0_149, %c0_150], %438 {strides = array<i32>} : memref<1x4x8x16xf32, #tpu.memory_space<vmem>>, vector<1x1x8x16xf32>,
    %cst_151 = arith.constant 0.000000e+00 : f32
    %439 = vector.broadcast %cst_151 : f32 to vector<8x128xf32>
    %c3_152 = arith.constant 3 : index
    %c0_153 = arith.constant 0 : index
    %c0_154 = arith.constant 0 : index
    %440 = vector.load %arg13[%c3_152, %c0_153, %c0_154] : memref<6x10x128xf32, #tpu.memory_space<vmem>>, vector<1x10x128xf32>
    %441 = vector.shape_cast %440 : vector<1x10x128xf32> to vector<10x128xf32>
    %442 = vector.extract_strided_slice %441 {offsets = [0, 0], sizes = [8, 128], strides = [1, 1]} : vector<10x128xf32> to vector<8x128xf32>
    %443 = vector.extract_strided_slice %154 {offsets = [0, 0], sizes = [1, 128], strides = [1, 1]} : vector<9x128xf32> to vector<1x128xf32>
    %444 = vector.shape_cast %443 : vector<1x128xf32> to vector<128xf32>
    %445 = vector.shape_cast %444 : vector<128xf32> to vector<1x128xf32>
    %446 = vector.broadcast %445 : vector<1x128xf32> to vector<8x128xf32>
    %447 = arith.mulf %442, %446 : vector<8x128xf32>
    %448 = arith.addf %439, %447 : vector<8x128xf32>
    %449 = vector.extract_strided_slice %441 {offsets = [1, 0], sizes = [8, 128], strides = [1, 1]} : vector<10x128xf32> to vector<8x128xf32>
    %450 = vector.extract_strided_slice %154 {offsets = [1, 0], sizes = [1, 128], strides = [1, 1]} : vector<9x128xf32> to vector<1x128xf32>
    %451 = vector.shape_cast %450 : vector<1x128xf32> to vector<128xf32>
    %452 = vector.shape_cast %451 : vector<128xf32> to vector<1x128xf32>
    %453 = vector.broadcast %452 : vector<1x128xf32> to vector<8x128xf32>
    %454 = arith.mulf %449, %453 : vector<8x128xf32>
    %455 = arith.addf %448, %454 : vector<8x128xf32>
    %456 = vector.extract_strided_slice %441 {offsets = [2, 0], sizes = [8, 128], strides = [1, 1]} : vector<10x128xf32> to vector<8x128xf32>
    %457 = vector.extract_strided_slice %154 {offsets = [2, 0], sizes = [1, 128], strides = [1, 1]} : vector<9x128xf32> to vector<1x128xf32>
    %458 = vector.shape_cast %457 : vector<1x128xf32> to vector<128xf32>
    %459 = vector.shape_cast %458 : vector<128xf32> to vector<1x128xf32>
    %460 = vector.broadcast %459 : vector<1x128xf32> to vector<8x128xf32>
    %461 = arith.mulf %456, %460 : vector<8x128xf32>
    %462 = arith.addf %455, %461 : vector<8x128xf32>
    %c4_155 = arith.constant 4 : index
    %c0_156 = arith.constant 0 : index
    %c0_157 = arith.constant 0 : index
    %463 = vector.load %arg13[%c4_155, %c0_156, %c0_157] : memref<6x10x128xf32, #tpu.memory_space<vmem>>, vector<1x10x128xf32>
    %464 = vector.shape_cast %463 : vector<1x10x128xf32> to vector<10x128xf32>
    %465 = vector.extract_strided_slice %464 {offsets = [0, 0], sizes = [8, 128], strides = [1, 1]} : vector<10x128xf32> to vector<8x128xf32>
    %466 = vector.extract_strided_slice %154 {offsets = [3, 0], sizes = [1, 128], strides = [1, 1]} : vector<9x128xf32> to vector<1x128xf32>
    %467 = vector.shape_cast %466 : vector<1x128xf32> to vector<128xf32>
    %468 = vector.shape_cast %467 : vector<128xf32> to vector<1x128xf32>
    %469 = vector.broadcast %468 : vector<1x128xf32> to vector<8x128xf32>
    %470 = arith.mulf %465, %469 : vector<8x128xf32>
    %471 = arith.addf %462, %470 : vector<8x128xf32>
    %472 = vector.extract_strided_slice %464 {offsets = [1, 0], sizes = [8, 128], strides = [1, 1]} : vector<10x128xf32> to vector<8x128xf32>
    %473 = vector.extract_strided_slice %154 {offsets = [4, 0], sizes = [1, 128], strides = [1, 1]} : vector<9x128xf32> to vector<1x128xf32>
    %474 = vector.shape_cast %473 : vector<1x128xf32> to vector<128xf32>
    %475 = vector.shape_cast %474 : vector<128xf32> to vector<1x128xf32>
    %476 = vector.broadcast %475 : vector<1x128xf32> to vector<8x128xf32>
    %477 = arith.mulf %472, %476 : vector<8x128xf32>
    %478 = arith.addf %471, %477 : vector<8x128xf32>
    %479 = vector.extract_strided_slice %464 {offsets = [2, 0], sizes = [8, 128], strides = [1, 1]} : vector<10x128xf32> to vector<8x128xf32>
    %480 = vector.extract_strided_slice %154 {offsets = [5, 0], sizes = [1, 128], strides = [1, 1]} : vector<9x128xf32> to vector<1x128xf32>
    %481 = vector.shape_cast %480 : vector<1x128xf32> to vector<128xf32>
    %482 = vector.shape_cast %481 : vector<128xf32> to vector<1x128xf32>
    %483 = vector.broadcast %482 : vector<1x128xf32> to vector<8x128xf32>
    %484 = arith.mulf %479, %483 : vector<8x128xf32>
    %485 = arith.addf %478, %484 : vector<8x128xf32>
    %c5_158 = arith.constant 5 : index
    %c0_159 = arith.constant 0 : index
    %c0_160 = arith.constant 0 : index
    %486 = vector.load %arg13[%c5_158, %c0_159, %c0_160] : memref<6x10x128xf32, #tpu.memory_space<vmem>>, vector<1x10x128xf32>
    %487 = vector.shape_cast %486 : vector<1x10x128xf32> to vector<10x128xf32>
    %488 = vector.extract_strided_slice %487 {offsets = [0, 0], sizes = [8, 128], strides = [1, 1]} : vector<10x128xf32> to vector<8x128xf32>
    %489 = vector.extract_strided_slice %154 {offsets = [6, 0], sizes = [1, 128], strides = [1, 1]} : vector<9x128xf32> to vector<1x128xf32>
    %490 = vector.shape_cast %489 : vector<1x128xf32> to vector<128xf32>
    %491 = vector.shape_cast %490 : vector<128xf32> to vector<1x128xf32>
    %492 = vector.broadcast %491 : vector<1x128xf32> to vector<8x128xf32>
    %493 = arith.mulf %488, %492 : vector<8x128xf32>
    %494 = arith.addf %485, %493 : vector<8x128xf32>
    %495 = vector.extract_strided_slice %487 {offsets = [1, 0], sizes = [8, 128], strides = [1, 1]} : vector<10x128xf32> to vector<8x128xf32>
    %496 = vector.extract_strided_slice %154 {offsets = [7, 0], sizes = [1, 128], strides = [1, 1]} : vector<9x128xf32> to vector<1x128xf32>
    %497 = vector.shape_cast %496 : vector<1x128xf32> to vector<128xf32>
    %498 = vector.shape_cast %497 : vector<128xf32> to vector<1x128xf32>
    %499 = vector.broadcast %498 : vector<1x128xf32> to vector<8x128xf32>
    %500 = arith.mulf %495, %499 : vector<8x128xf32>
    %501 = arith.addf %494, %500 : vector<8x128xf32>
    %502 = vector.extract_strided_slice %487 {offsets = [2, 0], sizes = [8, 128], strides = [1, 1]} : vector<10x128xf32> to vector<8x128xf32>
    %503 = vector.extract_strided_slice %154 {offsets = [8, 0], sizes = [1, 128], strides = [1, 1]} : vector<9x128xf32> to vector<1x128xf32>
    %504 = vector.shape_cast %503 : vector<1x128xf32> to vector<128xf32>
    %505 = vector.shape_cast %504 : vector<128xf32> to vector<1x128xf32>
    %506 = vector.broadcast %505 : vector<1x128xf32> to vector<8x128xf32>
    %507 = arith.mulf %502, %506 : vector<8x128xf32>
    %508 = arith.addf %501, %507 : vector<8x128xf32>
    %509 = vector.broadcast %155 : vector<1x128xf32> to vector<8x128xf32>
    %510 = arith.mulf %508, %509 : vector<8x128xf32>
    %511 = vector.broadcast %156 : vector<1x128xf32> to vector<8x128xf32>
    %512 = arith.addf %510, %511 : vector<8x128xf32>
    %cst_161 = arith.constant 0.000000e+00 : f32
    %cst_162 = arith.constant 6.000000e+00 : f32
    %513 = vector.broadcast %cst_161 : f32 to vector<8x128xf32>
    %514 = arith.maximumf %513, %512 : vector<8x128xf32>
    %515 = vector.broadcast %cst_162 : f32 to vector<8x128xf32>
    %516 = arith.minimumf %515, %514 : vector<8x128xf32>
    %cst_163 = arith.constant dense<0.000000e+00> : vector<8x16xf32>
    %517 = tpu.matmul %516, %157, %cst_163 {dimension_numbers = #tpu.dot_dimension_numbers<[1], [0], [0], [1], [0, 0, 1, 1], [], []>} : vector<8x128xf32>, vector<128x16xf32>, vector<8x16xf32> -> vector<8x16xf32>
    %518 = vector.broadcast %158 : vector<1x16xf32> to vector<8x16xf32>
    %519 = arith.mulf %517, %518 : vector<8x16xf32>
    %520 = vector.broadcast %159 : vector<1x16xf32> to vector<8x16xf32>
    %521 = arith.addf %519, %520 : vector<8x16xf32>
    %c3_i32_164 = arith.constant 3 : i32
    %522 = arith.addi %0, %c3_i32_164 : i32
    %c1_i32_165 = arith.constant 1 : i32
    %523 = arith.addi %522, %c1_i32_165 : i32
    %c0_166 = arith.constant 0 : index
    %524 = arith.index_cast %523 : i32 to index
    %c0_167 = arith.constant 0 : index
    %c0_168 = arith.constant 0 : index
    %525 = vector.load %arg2[%c0_166, %524, %c0_167, %c0_168] : memref<1x10x10x16xf32, #tpu.memory_space<vmem>>, vector<1x1x10x16xf32>
    %526 = vector.shape_cast %525 : vector<1x1x10x16xf32> to vector<10x16xf32>
    %527 = vector.extract_strided_slice %526 {offsets = [1, 0], sizes = [8, 16], strides = [1, 1]} : vector<10x16xf32> to vector<8x16xf32>
    %528 = arith.addf %521, %527 : vector<8x16xf32>
    %c0_169 = arith.constant 0 : index
    %c3_170 = arith.constant 3 : index
    %c0_171 = arith.constant 0 : index
    %c0_172 = arith.constant 0 : index
    %529 = vector.load %arg12[%c0_169, %c3_170, %c0_171, %c0_172] : memref<1x4x8x16xf32, #tpu.memory_space<vmem>>, vector<1x1x8x16xf32>
    %530 = vector.shape_cast %529 : vector<1x1x8x16xf32> to vector<8x16xf32>
    %531 = vector.shape_cast %528 : vector<8x16xf32> to vector<1x1x8x16xf32>
    tpu.vector_store %arg12[%c0_169, %c3_170, %c0_171, %c0_172], %531 {strides = array<i32>} : memref<1x4x8x16xf32, #tpu.memory_space<vmem>>, vector<1x1x8x16xf32>,
    return
  }
  func.func @transform_0(%arg0: i32, %arg1: i32) -> (i32, i32, i32, i32) {
    %c0_i32 = arith.constant 0 : i32
    %c0_i32_0 = arith.constant 0 : i32
    %c0_i32_1 = arith.constant 0 : i32
    %c0_i32_2 = arith.constant 0 : i32
    return %arg0, %c0_i32, %c0_i32_0, %c0_i32_1 : i32, i32, i32, i32
  }
  func.func @transform_1(%arg0: i32, %arg1: i32) -> (i32, i32) {
    %c0_i32 = arith.constant 0 : i32
    %c0_i32_0 = arith.constant 0 : i32
    %c0_i32_1 = arith.constant 0 : i32
    return %c0_i32, %c0_i32_0 : i32, i32
  }
  func.func @transform_2(%arg0: i32, %arg1: i32) -> (i32, i32) {
    %c0_i32 = arith.constant 0 : i32
    %c0_i32_0 = arith.constant 0 : i32
    %c0_i32_1 = arith.constant 0 : i32
    return %c0_i32, %c0_i32_0 : i32, i32
  }
  func.func @transform_3(%arg0: i32, %arg1: i32) -> (i32, i32) {
    %c0_i32 = arith.constant 0 : i32
    %c0_i32_0 = arith.constant 0 : i32
    %c0_i32_1 = arith.constant 0 : i32
    return %c0_i32, %c0_i32_0 : i32, i32
  }
  func.func @transform_4(%arg0: i32, %arg1: i32) -> (i32, i32) {
    %c0_i32 = arith.constant 0 : i32
    %c0_i32_0 = arith.constant 0 : i32
    %c0_i32_1 = arith.constant 0 : i32
    return %c0_i32, %c0_i32_0 : i32, i32
  }
  func.func @transform_5(%arg0: i32, %arg1: i32) -> (i32, i32) {
    %c0_i32 = arith.constant 0 : i32
    %c0_i32_0 = arith.constant 0 : i32
    %c0_i32_1 = arith.constant 0 : i32
    return %c0_i32, %c0_i32_0 : i32, i32
  }
  func.func @transform_6(%arg0: i32, %arg1: i32) -> (i32, i32) {
    %c0_i32 = arith.constant 0 : i32
    %c0_i32_0 = arith.constant 0 : i32
    %c0_i32_1 = arith.constant 0 : i32
    return %c0_i32, %c0_i32_0 : i32, i32
  }
  func.func @transform_7(%arg0: i32, %arg1: i32) -> (i32, i32) {
    %c0_i32 = arith.constant 0 : i32
    %c0_i32_0 = arith.constant 0 : i32
    %c0_i32_1 = arith.constant 0 : i32
    return %c0_i32, %c0_i32_0 : i32, i32
  }
  func.func @transform_8(%arg0: i32, %arg1: i32) -> (i32, i32) {
    %c0_i32 = arith.constant 0 : i32
    %c0_i32_0 = arith.constant 0 : i32
    %c0_i32_1 = arith.constant 0 : i32
    return %c0_i32, %c0_i32_0 : i32, i32
  }
  func.func @transform_9(%arg0: i32, %arg1: i32) -> (i32, i32) {
    %c0_i32 = arith.constant 0 : i32
    %c0_i32_0 = arith.constant 0 : i32
    %c0_i32_1 = arith.constant 0 : i32
    return %c0_i32, %c0_i32_0 : i32, i32
  }
  func.func @transform_10(%arg0: i32, %arg1: i32) -> (i32, i32, i32, i32) {
    %c0_i32 = arith.constant 0 : i32
    %c0_i32_0 = arith.constant 0 : i32
    %c0_i32_1 = arith.constant 0 : i32
    return %arg0, %arg1, %c0_i32, %c0_i32_0 : i32, i32, i32, i32
  }
}

</mosaic_0001>

<bundles_post_ra>
// kernel: tpu_custom_call.1
= control target key start
LH: loop header
LB: loop body
LE: loop exit
PB: predicated region body
PF: predicated region fallthrough
CT: control target
= control target key end

     0   :  { %s2489_s0 = inlined_call_operand.vmem [shape: f32[2,10,10,16], index: 0, kind: input, shape index: {}]   ;;  %s2490_s1 = inlined_call_operand.vmem [shape: f32[16,128], index: 1, kind: input, shape index: {}]   ;;  %s2491_s2 = inlined_call_operand.vmem [shape: f32[1,128], index: 2, kind: input, shape index: {}]   ;;  %s2492_s3 = inlined_call_operand.vmem [shape: f32[1,128], index: 3, kind: input, shape index: {}]   ;;  %s2493_s4 = inlined_call_operand.vmem [shape: f32[9,128], index: 4, kind: input, shape index: {}]   ;;  %s2494_s5 = inlined_call_operand.vmem [shape: f32[1,128], index: 5, kind: input, shape index: {}]   ;;  %s2495_s6 = inlined_call_operand.vmem [shape: f32[1,128], index: 6, kind: input, shape index: {}]   ;;  %s2496_s7 = inlined_call_operand.vmem [shape: f32[128,16], index: 7, kind: input, shape index: {}]   ;;  %s2497_s8 = inlined_call_operand.vmem [shape: f32[1,16], index: 8, kind: input, shape index: {}]   ;;  %s2498_s9 = inlined_call_operand.vmem [shape: f32[1,16], index: 9, kind: input, shape index: {}]   ;;  %s2499_s10 = inlined_call_operand.hbm [shape: f32[2,8,8,16], index: 10, kind: output, shape index: {}]  }
   0x1   :  { %2514 = sst [smem:[#allocation16_spill]] %s2489_s0 }
   0x2   :  { %2515 = sst [smem:[#allocation17_spill]] %s2490_s1 }
   0x3   :  { %2516 = sst [smem:[#allocation18_spill]] %s2499_s10 }
   0x4   :  { %15 = vsyncpa [#allocation4], 0 }
   0x5   :  { %17 = vsyncpa [#allocation4 + $0x1], 0  ;;  %s1620_s13 = smov 0   ;;  %s1622_s14 = smov 0  }
   0x6   :  { %s1624_s15 = smov 0   ;;  %s1626_s16 = smov 0  }
   0x7   :  { %s1628_s17 = smov 0   ;;  %s1630_s18 = smov 0  }
   0x8   :  { %s1632_s19 = smov 0   ;;  %s1634_s20 = smov 0  }
   0x9 LB: > { %2517 = sst [smem:[#allocation6_spill]] %s1533_s13  ;;  %s1318_s21 = sadd.s32 4294967295, %s1561_s20   ;;  %s1561_s20 = sphi %s1634_s20, %s23_s20   ;;  %s1557_s19 = sphi %s1632_s19, %s2611_s19   ;;  %s1553_s18 = sphi %s1630_s18, %s2610_s18   ;;  %s1549_s17 = sphi %s1628_s17, %s2609_s17   ;;  %s1545_s16 = sphi %s1626_s16, %s2608_s16   ;;  %s1541_s15 = sphi %s1624_s15, %s2607_s15   ;;  %s1537_s14 = sphi %s1622_s14, %s2613_s14   ;;  %s1533_s13 = sphi %s1620_s13, %s2612_s13  }
   0xa   : > { %2518 = sst [smem:[#allocation7_spill]] %s1541_s15  ;;  %s1319_s22 = sadd.s32 4294967294, %s1561_s20  }
   0xb   : > { %2519 = sst [smem:[#allocation8_spill]] %s1553_s18  ;;  %s32_s23 = sadd.s32 1, %s1553_s18 }
   0xc   : > { %2520 = sst [smem:[#allocation9_spill]] %s1557_s19  ;;  %p33_p0 = scmp.ge.s32.totalorder %s32_s23, 2 }
   0xd   : > { %2521 = sst [smem:[#allocation10_spill]] %s1561_s20  ;;  %s35_s24 = sadd.s32 1, %s1557_s19 }
   0xe   : > { %p269_p1 = scmp.ne.s32.totalorder %s1541_s15, %s1537_s14  ;;  %p270_p2 = scmp.eq.s32.totalorder %s1318_s21, 3 }
   0xf   : > { %s2615_s23 = smov (%p33_p0, %s32_s23), 0  ;;  %s2617_s24 = smov (!%p33_p0, %s35_s24), %s1557_s19 }
  0x10   : > { %2522 = sst [smem:[#allocation11_spill]] %s2615_s23  ;;  %s255_s25 = ssub.s32 %s1553_s18, %s2615_s23 }
  0x11   : > { %p1671_p3 = por %p270_p2, %p269_p1  ;;  %p37_p4 = scmp.ge.s32.totalorder %s2617_s24, 2 }
  0x12   : > { %p275_p5 = scmp.ne.s32.totalorder %s1537_s14, %s1533_s13  ;;  %p276_p6 = scmp.eq.s32.totalorder %s1319_s22, 3 }
  0x13   : > { %s2523_s26 = scalar_select %p1671_p3, 1, 0 }
  0x14   : > { %p1322_p7 = scmp.ge.s32.totalorder %s1561_s20, 1  ;;  %s2619_s24 = smov (%p37_p4, %s2617_s24), 0 }
  0x15   : > { %2524 = sst [smem:[#allocation12_spill]] %s2523_s26  ;;  %p1680_p8 = por %p276_p6, %p275_p5 }
  0x16   : > { %2525 = sst [smem:[#allocation13_spill]] %s2619_s24  ;;  %p329_p9 = scmp.lt.s32.totalorder %s1561_s20, 5 }
  0x17   : > { %s2526_s27 = scalar_select %p1680_p8, 1, 0 }
  0x18   : > { %s254_s28 = ssub.s32 %s1557_s19, %s2619_s24  ;;  %s259_s29 = sadd.s32 1, %s1541_s15 }
  0x19   : > { %2527 = sst [smem:[#allocation14_spill]] %s2526_s27  ;;  %s256_s30 = sor.u32 %s255_s25, %s254_s28 }
  0x1a   : > { %p330_p10 = pnand %p1322_p7, %p329_p9  ;;  %p257_p11 = scmp.eq.s32.totalorder %s256_s30, 0 }
  0x1b   : > { %s2529_s1 = sld [smem:[#allocation17_spill]] (!%p330_p10)  ;;  %p367_p12 = scmp.lt.s32.totalorder (!%p330_p10), %s1549_s17, 1 }
  0x1c   : > { %s1689_s11 = scalar_select %p257_p11, %s1541_s15, %s259_s29  }
  0x1d   : > { %333 = sbr.rel (%p330_p10) target bundleno = 385 (0x181), region = 60  ;;  %s1376_s29 = sshll.u32 (!%p330_p10), %s1545_s16, 6 }
  0x1e   : > { %2528 = sst [smem:[#allocation15_spill]] %s1689_s11  ;;  %s1733_s22 = sshll.u32 (!%p330_p10), %s1545_s16, 2 }
  0x1f   : > { %s2530_s0 = sld [smem:[#allocation16_spill]] (!%p330_p10)  ;;  %p435_p13 = scmp.ge.s32.totalorder (!%p330_p10), %s1733_s22, 1 }
  0x20   : > { %p441_p0 = scmp.le.s32.totalorder (!%p330_p10), %s1733_s22, 8  ;;  %s687_s20 = sadd.s32 (!%p330_p10), 5, %s1733_s22 }
  0x21   : > { %p1812_p11 = scmp.ge.s32.totalorder (!%p330_p10), %s687_s20, 1 }
  0x22   : > { %v375_v0 = vld [vmem:[%s2529_s1 + $0x8] sm:$0xff]  ;;  %v374_v1 = vld [vmem:[%s2529_s1] sm:$0xff]  ;;  %s368_s25 = scalar_select %p367_p12, %s1549_s17, 1  ;;  %vm2512_vm0 = vcmask 130048   ;;  %v378_v14 = vlaneseq  ;;  %v765_v16 = vld [vmem:[%s2496_s7 + $0x78] sm:$0xff] }
  0x23   : > { %1382 = vmatpush.msra.mxu2 %v375_v0  ;;  %1384 = vmatpush.msra.mxu3 %v375_v0  ;;  %s1746_s16 = scalar_select %p435_p13, 1, 0  ;;  %v764_v17 = vld [vmem:[%s2496_s7 + $0x70] sm:$0xff]  ;;  %v763_v21 = vld [vmem:[%s2496_s7 + $0x68] sm:$0xff]  ;;  %v1819_v22 = vld [vmem:[%s2491_s2] ss:$0 sm:$0xff] }
  0x24   : > { %412 = vmatpush.msra.mxu0 %v375_v0  ;;  %476 = vmatpush.msra.mxu1 %v375_v0  ;;  %s1386_s28 = smul.u32 160, %s368_s25  ;;  %s451_s25 = sadd.s32 1, %s1733_s22  ;;  %v1777_v15 = vshrl.u32 %v378_v14, 7  ;;  %v762_v25 = vld [vmem:[%s2496_s7 + $0x60] sm:$0xff]  ;;  %v761_v31 = vld [vmem:[%s2496_s7 + $0x58] sm:$0xff]  ;;  %v760_v37 = vld [vmem:[%s2496_s7 + $0x50] sm:$0xff] }
  0x25   : > { %1383 = vmatpush.msra.mxu2 %v374_v1  ;;  %1385 = vmatpush.msra.mxu3 %v374_v1  ;;  %p1738_p1 = scmp.ge.s32.totalorder %s451_s25, 1  ;;  %p1742_p2 = scmp.le.s32.totalorder %s451_s25, 8  ;;  %v437_v18 = vstv %s1746_s16  ;;  %v1864_v33 = vld [vmem:[%s2492_s3] ss:$0 sm:$0xff]  ;;  %v759_v45 = vld [vmem:[%s2496_s7 + $0x48] sm:$0xff]  ;;  %v757_v62 = vld [vmem:[%s2496_s7 + $0x38] sm:$0xff] }
  0x26   : > { %413 = vmatpush.msra.mxu0 %v374_v1  ;;  %477 = vmatpush.msra.mxu1 %v374_v1  ;;  %s371_s21 = scalar_lea.vmem %s2530_s0, %s1386_s28  ;;  %s628_s0 = sadd.s32 4, %s1733_s22  ;;  %v1798_v19 = vadd.s32 8, %v1777_v15  ;;  %vm381_vm1 = vcmp.ge.s32.totalorder %v1777_v15, 1  ;;  %vm1821_vm2 = vcmp.eq.s32.totalorder %v437_v18, 1  ;;  %v1921_v46 = vld [vmem:[%s2493_s4] sm:$0xff]  ;;  %v755_v23 = vld [vmem:[%s2496_s7 + $0x28] sm:$0xff] }
  0x27   : > { %535 = vmatpush.msrb.mxu2 %v375_v0  ;;  %594 = vmatpush.msrb.mxu3 %v375_v0  ;;  %s1703_s23 = scalar_lea.vmem %s371_s21, %s1376_s29  ;;  %s510_s21 = sadd.s32 2, %s1733_s22  ;;  %vm1835_vm3 = vmand %vm381_vm1, %vm1821_vm2  ;;  %v758_v53 = vld [vmem:[%s2496_s7 + $0x40] sm:$0xff]  ;;  %v1962_v57 = vperm.slane %v1921_v46, 0  ;;  %v1981_v63 = vperm.slane %v1921_v46, 1  ;;  %v753_v51 = vld [vmem:[%s2496_s7 + $0x18] sm:$0xff] }
  0x28   : > { %653 = vmatpush.msrb.mxu0 %v375_v0  ;;  %712 = vmatpush.msrb.mxu1 %v375_v0  ;;  %v390_v2 = vld [vmem:[%s1703_s23 + $0x8] sm:$0x3]  ;;  %v1332_v3 = vld [vmem:[%s1703_s23 + $0x18] sm:$0x3]  ;;  %v389_v4 = vld [vmem:[%s1703_s23] sm:$0xff]  ;;  %p1756_p4 = scmp.ge.s32.totalorder %s510_s21, 1 }
  0x29   : > { %536 = vmatpush.msrb.mxu2 %v374_v1  ;;  %595 = vmatpush.msrb.mxu3 %v374_v1  ;;  %v1711_v5 = vld [vmem:[%s1703_s23 + $0x10] sm:$0xff]  ;;  %v1337_v6 = vld [vmem:[%s1703_s23 + $0x20] sm:$0xff]  ;;  %v1338_v10 = vld [vmem:[%s1703_s23 + $0x28] sm:$0x3]  ;;  %s1748_s30 = scalar_select %p441_p0, 1, 0 }
  0x2a   : > { %1328 = vmatmul.msk.f32.vlgmr.msra.gmra.mxu2 %vm2512_vm0, %v390_v2  ;;  %1334 = vmatmul.msk.f32.vlgmr.msra.gmra.mxu3 %vm2512_vm0, %v1332_v3  ;;  %v1343_v7 = vld [vmem:[%s1703_s23 + $0x30] sm:$0xff]  ;;  %v1349_v8 = vld [vmem:[%s1703_s23 + $0x40] sm:$0xff]  ;;  %v1344_v11 = vld [vmem:[%s1703_s23 + $0x38] sm:$0x3]  ;;  %s494_s12 = scalar_select %p1738_p1, 1, 0 }
  0x2b   : > { %1327 = vmatmul.msk.f32.vlgmr.msra.gmra.mxu0 %vm2512_vm0, %v389_v4  ;;  %1333 = vmatmul.msk.f32.vlgmr.msra.gmra.mxu1 %vm2512_vm0, %v1711_v5  ;;  %v1355_v9 = vld [vmem:[%s1703_s23 + $0x50] sm:$0xff]  ;;  %v1350_v12 = vld [vmem:[%s1703_s23 + $0x48] sm:$0x3]  ;;  %v1356_v13 = vld [vmem:[%s1703_s23 + $0x58] sm:$0x3]  ;;  %s569_s25 = sadd.s32 3, %s1733_s22  ;;  %v443_v24 = vstv %s1748_s30 }
  0x2c   : > { %654 = vmatpush.msrb.mxu0 %v374_v1  ;;  %713 = vmatpush.msrb.mxu1 %v374_v1  ;;  %p1761_p5 = scmp.ge.s32.totalorder %s628_s0, 1  ;;  %p1765_p6 = scmp.le.s32.totalorder %s628_s0, 8  ;;  %v1803_v20 = vstv %s494_s12  ;;  %vm2513_vm4 = vcmp.le.s32.totalorder %v1798_v19, 8  ;;  %vm1880_vm6 = vcmp.eq.s32.totalorder %v443_v24, 1  ;;  %v1990_v4 = vperm.slane %v1921_v46, 2 }
  0x2d   : > { %p1769_p7 = scmp.le.s32.totalorder %s510_s21, 8  ;;  %p1773_p9 = scmp.ge.s32.totalorder %s569_s25, 1  ;;  %855 = vmatpush.msra.mxu2 %v765_v16  ;;  %963 = vmatpush.msra.mxu3 %v765_v16  ;;  %vm496_vm5 = vcmp.eq.s32.totalorder %v1803_v20, 1  ;;  %vm445_vm8 = vmand %vm1835_vm3, %vm1880_vm6  ;;  %v2047_v24 = vperm.slane %v1921_v46, 4 }
  0x2e   : > { %s553_s11 = scalar_select %p1756_p4, 1, 0  ;;  %1066 = vmatpush.msra.mxu0 %v765_v16  ;;  %1169 = vmatpush.msra.mxu1 %v765_v16  ;;  %vm1888_vm7 = vmand %vm381_vm1, %vm496_vm5 }
  0x2f   : > { %s671_s15 = scalar_select %p1761_p5, 1, 0  ;;  %856 = vmatpush.msra.mxu2 %v764_v17  ;;  %964 = vmatpush.msra.mxu3 %v764_v17  ;;  %vm1927_vm9 = vmand %vm2513_vm4, %vm1821_vm2 }
  0x30   : > { %s677_s21 = scalar_select %p1765_p6, 1, 0  ;;  %1067 = vmatpush.msra.mxu0 %v764_v17  ;;  %1170 = vmatpush.msra.mxu1 %v764_v17  ;;  %v1875_v36 = vstv %s553_s11 }
  0x31   : > { %p1788_p10 = scmp.le.s32.totalorder %s569_s25, 8  ;;  %857 = vmatpush.msra.mxu2 %v763_v21  ;;  %965 = vmatpush.msra.mxu3 %v763_v21  ;;  %v1849_v30 = vstv %s671_s15  ;;  %p1853_p12 = scmp.le.s32.totalorder %s687_s20, 8  ;;  %vm555_vm13 = vcmp.eq.s32.totalorder %v1875_v36, 1 }
  0x32   : > { %1339 = vmatmul.msk.f32.vlgmr.msrb.gmra.mxu2 %vm2512_vm0, %v1337_v6  ;;  %1345 = vmatmul.msk.f32.vlgmr.msrb.gmra.mxu3 %vm2512_vm0, %v1343_v7  ;;  %s559_s27 = scalar_select %p1769_p7, 1, 0  ;;  %v1870_v35 = vstv %s677_s21  ;;  %vm673_vm11 = vcmp.eq.s32.totalorder %v1849_v30, 1  ;;  %v1993_v6 = vperm.slane %v1921_v46, 3 }
  0x33   : > { %1351 = vmatmul.msk.f32.vlgmr.msrb.gmra.mxu0 %vm2512_vm0, %v1349_v8  ;;  %1357 = vmatmul.msk.f32.vlgmr.msrb.gmra.mxu1 %vm2512_vm0, %v1355_v9  ;;  %s618_s10 = scalar_select %p1788_p10, 1, 0  ;;  %vm679_vm12 = vcmp.eq.s32.totalorder %v1870_v35, 1  ;;  %vm1968_vm15 = vmand %vm381_vm1, %vm673_vm11  ;;  %v752_v8 = vld [vmem:[%s2496_s7 + $0x10] sm:$0xff] }
  0x34   : > { %1068 = vmatpush.msra.mxu0 %v763_v21  ;;  %1171 = vmatpush.msra.mxu1 %v763_v21  ;;  %s2544_s30 = scalar_select %p1742_p2, 1, 0  ;;  %v1895_v40 = vstv %s559_s27  ;;  %vm2028_vm3 = vmand %vm1968_vm15, %vm679_vm12 }
  0x35   : > { %858 = vmatpush.msra.mxu2 %v762_v25  ;;  %966 = vmatpush.msra.mxu3 %v762_v25  ;;  %s2550_s24 = scalar_select %p1773_p9, 1, 0  ;;  %v1911_v44 = vstv %s618_s10 }
  0x36   : > { %v1844_v29 = vstv %s2544_s30  ;;  %1069 = vmatpush.msra.mxu0 %v762_v25  ;;  %1172 = vmatpush.msra.mxu1 %v762_v25  ;;  %s730_s1 = scalar_select %p1812_p11, 1, 0  ;;  %v2050_v25 = vperm.slane %v1921_v46, 5 }
  0x37   : > { %v1900_v41 = vstv %s2550_s24  ;;  %859 = vmatpush.msra.mxu2 %v761_v31  ;;  %967 = vmatpush.msra.mxu3 %v761_v31  ;;  %vm502_vm10 = vcmp.eq.s32.totalorder %v1844_v29, 1  ;;  %s736_s13 = scalar_select %p1853_p12, 1, 0  ;;  %v2062_v29 = vperm.slane %v1921_v46, 6 }
  0x38   : > { %1070 = vmatpush.msra.mxu0 %v761_v31  ;;  %1173 = vmatpush.msra.mxu1 %v761_v31  ;;  %vm1941_vm14 = vmand %vm1888_vm7, %vm502_vm10  ;;  %vm614_vm2 = vcmp.eq.s32.totalorder %v1900_v41, 1  ;;  %v1975_v61 = vstv %s730_s1  ;;  %s364_s0 = sand.u32 1, %s1537_s14   ;;  %s1372_s24 = sshll.u32 %s1549_s17, 3 }
  0x39   : > { %860 = vmatpush.msra.mxu2 %v760_v37  ;;  %968 = vmatpush.msra.mxu3 %v760_v37  ;;  %vm1956_vm7 = vmand %vm2513_vm4, %vm496_vm5  ;;  %s1323_s15 = sshll.u32 %s364_s0, 5  ;;  %s1214_s1 = sadd.s32 %s1372_s24, %s1733_s22 }
  0x3a   : > { %1340 = vmatmul.msk.f32.gmra.mxu2 %vm2512_vm0, %v1338_v10  ;;  %1346 = vmatmul.msk.f32.gmra.mxu3 %vm2512_vm0, %v1344_v11  ;;  %vm446_vm5 = vmand %vm1927_vm9, %vm1880_vm6  ;;  %v2015_v11 = vstv %s736_s13  ;;  %vm778_vm9 = vcmask 1046528   ;;  %s2428_s20 = scalar_lea.vmem [#allocation3], %s1323_s15  ;;  %s1373_s18 = sshll.u32 %s1214_s1, 3 }
  0x3b   : > { %1352 = vmatmul.msk.f32.gmra.mxu0 %vm2512_vm0, %v1350_v12  ;;  %1358 = vmatmul.msk.f32.gmra.mxu1 %vm2512_vm0, %v1356_v13  ;;  %vm620_vm0 = vcmp.eq.s32.totalorder %v1911_v44, 1  ;;  %vm2006_vm4 = vmand %vm1956_vm7, %vm502_vm10  ;;  %v756_v12 = vld [vmem:[%s2496_s7 + $0x30] sm:$0xff]  ;;  %vm738_vm15 = vcmp.eq.s32.totalorder %v2015_v11, 1  ;;  %s2600_s21 = sld [smem:[#allocation18_spill]]  ;;  %s1217_s27 = sshll.u32 %s2428_s20, 4  ;;  %s1218_s27 = int_to_ptr.vmem [resolvable:$true] %s1217_s27 }
  0x3c   : > { %1071 = vmatpush.msra.mxu0 %v760_v37  ;;  %1174 = vmatpush.msra.mxu1 %v760_v37  ;;  %vm2068_vm7 = vmand %vm381_vm1, %vm614_vm2 }
  0x3d   : > { %861 = vmatpush.msra.mxu2 %v759_v45  ;;  %969 = vmatpush.msra.mxu3 %v759_v45 }
  0x3e   : > { %1072 = vmatpush.msra.mxu0 %v759_v45  ;;  %1175 = vmatpush.msra.mxu1 %v759_v45  ;;  %v2080_v45 = vperm.slane %v1921_v46, 7 }
  0x3f   : > { %862 = vmatpush.msra.mxu2 %v758_v53  ;;  %970 = vmatpush.msra.mxu3 %v758_v53 }
  0x40   : > { %1073 = vmatpush.msra.mxu0 %v758_v53  ;;  %1176 = vmatpush.msra.mxu1 %v758_v53 }
  0x41   : > { %863 = vmatpush.msra.mxu2 %v757_v62  ;;  %971 = vmatpush.msra.mxu3 %v757_v62  ;;  %s1216_s13 = scalar_lea.hbm %s2600_s21, %s1373_s18  ;;  %s1487_s12 = scalar_lea.hbm %s2600_s21, 128 }
  0x42   : > { %1074 = vmatpush.msra.mxu0 %v757_v62  ;;  %1177 = vmatpush.msra.mxu1 %v757_v62  ;;  %s1219_s22 = sshll.u32 %s1216_s13, 4  ;;  %s1220_s22 = int_to_ptr.hbm [resolvable:$true] %s1219_s22 }
  0x43   : > { %864 = vmatpush.msra.mxu2 %v756_v12  ;;  %972 = vmatpush.msra.mxu3 %v756_v12  ;;  %s1481_s10 = sshra.s32 %s1220_s22, 4  ;;  %s1482_s10 = int_to_ptr.hbm [resolvable:$true] %s1481_s10 }
  0x44   : > { %1075 = vmatpush.msra.mxu0 %v756_v12  ;;  %1178 = vmatpush.msra.mxu1 %v756_v12  ;;  %s1483_s26 = scalar_lea.hbm %s1482_s10, 32  ;;  %p1488_p2 = scmp.lt.s32.totalorder %s1482_s10, %s2600_s21 }
  0x45   : > { %865 = vmatpush.msra.mxu2 %v755_v23  ;;  %973 = vmatpush.msra.mxu3 %v755_v23  ;;  %p1484_p13 = scmp.ne.s32.totalorder %s1482_s10, %s1483_s26  ;;  %p1489_p4 = scmp.lt.s32.totalorder %s1487_s12, %s1483_s26 }
  0x46   : > { %1076 = vmatpush.msra.mxu0 %v755_v23  ;;  %1179 = vmatpush.msra.mxu1 %v755_v23 }
  0x47   : > { %p1485_p0 = pnand %p1484_p13, %p1671_p3  ;;  %p1490_p5 = por %p1489_p4, %p1488_p2 }
  0x49   : > { %p1486_p1 = pneg %p1485_p0 }
  0x4b   : > { %p1491_p6 = pnand %p1490_p5, %p1486_p1 }
  0xa8   : > { %v415_v26 = vpop.f32.mrf.mxu0  ;;  %v479_v28 = vpop.f32.mrf.mxu1 }
  0xa9   : > { %v424_v32 = vmul.f32 %v1819_v22, %v415_v26  ;;  %v485_v34 = vmul.f32 %v1819_v22, %v479_v28 }
  0xab   : > { %v429_v42 = vadd.f32 %v1864_v33, %v424_v32  ;;  %v487_v43 = vadd.f32 %v1864_v33, %v485_v34 }
  0xad   : > { %v431_v48 = vmax.f32 %v429_v42, 0.0  ;;  %v418_v49 = vpop.f32.mrf.mxu2  ;;  %v489_v50 = vmax.f32 %v487_v43, 0.0  ;;  %v482_v52 = vpop.f32.mrf.mxu3  ;;  %v754_v42 = vld [vmem:[%s2496_s7 + $0x20] sm:$0xff] }
  0xae   : > { %v425_v54 = vmul.f32 %v1819_v22, %v418_v49  ;;  %v486_v55 = vmul.f32 %v1819_v22, %v482_v52  ;;  %866 = vmatpush.msra.mxu2 %v754_v42  ;;  %974 = vmatpush.msra.mxu3 %v754_v42 }
  0xaf   : > { %v433_v58 = vmin.f32 %v431_v48, 6.0  ;;  %v491_v59 = vmin.f32 %v489_v50, 6.0  ;;  %1077 = vmatpush.msra.mxu0 %v754_v42  ;;  %1180 = vmatpush.msra.mxu1 %v754_v42 }
  0xb0   : > { %v430_v0 = vadd.f32 %v1864_v33, %v425_v54  ;;  %v488_v1 = vadd.f32 %v1864_v33, %v486_v55  ;;  %v656_v2 = vpop.f32.mrf.mxu0  ;;  %v715_v3 = vpop.f32.mrf.mxu1  ;;  %867 = vmatpush.msra.mxu2 %v753_v51  ;;  %975 = vmatpush.msra.mxu3 %v753_v51 }
  0xb1   : > { %v2000_v7 = vsel %vm445_vm8, %v433_v58, 0.0  ;;  %v662_v9 = vmul.f32 %v1819_v22, %v656_v2  ;;  %v721_v10 = vmul.f32 %v1819_v22, %v715_v3  ;;  %v2022_v14 = vsel %vm1941_vm14, %v491_v59, 0.0  ;;  %vm2056_vm14 = vmand %vm381_vm1, %vm555_vm13  ;;  %1078 = vmatpush.msra.mxu0 %v753_v51  ;;  %1181 = vmatpush.msra.mxu1 %v753_v51 }
  0xb2   : > { %v432_v13 = vmax.f32 %v430_v0, 0.0  ;;  %v490_v16 = vmax.f32 %v488_v1, 0.0  ;;  %vm732_vm8 = vcmp.eq.s32.totalorder %v1975_v61, 1  ;;  %v2077_v43 = vmul.f32 %v1981_v63, %v2000_v7  ;;  %868 = vmatpush.msra.mxu2 %v752_v8  ;;  %976 = vmatpush.msra.mxu3 %v752_v8 }
  0xb3   : > { %v664_v18 = vadd.f32 %v1864_v33, %v662_v9  ;;  %v723_v20 = vadd.f32 %v1864_v33, %v721_v10  ;;  %vm2039_vm10 = vmand %vm381_vm1, %vm732_vm8  ;;  %v2104_v52 = vmul.f32 %v1990_v4, %v2000_v7  ;;  %v2108_v53 = vmul.f32 %v2047_v24, %v2022_v14  ;;  %1079 = vmatpush.msra.mxu0 %v752_v8 }
  0xb4   : > { %v434_v26 = vmin.f32 %v432_v13, 6.0  ;;  %v492_v27 = vmin.f32 %v490_v16, 6.0  ;;  %vm2095_vm1 = vmand %vm2039_vm10, %vm738_vm15  ;;  %v2122_v60 = vmul.f32 %v2050_v25, %v2022_v14  ;;  %v2155_v13 = vmul.f32 %v1962_v57, %v2000_v7  ;;  %v751_v7 = vld [vmem:[%s2496_s7 + $0x8] sm:$0xff]  ;;  %1182 = vmatpush.msra.mxu1 %v752_v8 }
  0xb5   : > { %v666_v31 = vmax.f32 %v664_v18, 0.0  ;;  %v538_v32 = vpop.f32.mrf.mxu2  ;;  %v597_v34 = vpop.f32.mrf.mxu3  ;;  %v725_v39 = vmax.f32 %v723_v20, 0.0  ;;  %v2159_v16 = vmul.f32 %v1993_v6, %v2022_v14  ;;  %v779_v20 = vrot.slane %v2077_v43, 1  ;;  %869 = vmatpush.msra.mxu2 %v751_v7  ;;  %977 = vmatpush.msra.mxu3 %v751_v7 }
  0xb6   : > { %v448_v15 = vsel %vm446_vm5, %v434_v26, 0.0  ;;  %v506_v48 = vsel %vm2006_vm4, %v492_v27, 0.0  ;;  %v544_v49 = vmul.f32 %v1819_v22, %v538_v32  ;;  %v603_v50 = vmul.f32 %v1819_v22, %v597_v34  ;;  %vm2132_vm5 = vmand %vm2068_vm7, %vm620_vm0  ;;  %1080 = vmatpush.msra.mxu0 %v751_v7  ;;  %1183 = vmatpush.msra.mxu1 %v751_v7 }
  0xb7   : > { %450 = vst [vmem:[#allocation2] sm:$0x3] %v448_v15  ;;  %v668_v38 = vmin.f32 %v666_v31, 6.0  ;;  %v727_v47 = vmin.f32 %v725_v39, 6.0  ;;  %vm2571_vm4 = vcmp.eq.s32.totalorder %v1895_v40, 1  ;;  %v790_v21 = vrot.slane %v2104_v52, 2 }
  0xb8   : > { %509 = vst [vmem:[#allocation2 + $0x18] sm:$0x3] %v506_v48  ;;  %v546_v54 = vadd.f32 %v1864_v33, %v544_v49  ;;  %vm2115_vm6 = vmand %vm2056_vm14, %vm2571_vm4  ;;  %v605_v56 = vadd.f32 %v1864_v33, %v603_v50  ;;  %v659_v58 = vpop.f32.mrf.mxu0  ;;  %v718_v59 = vpop.f32.mrf.mxu1  ;;  %v805_v61 = vrot.slane %v2108_v53, 1  ;;  %v815_v27 = vrot.slane %v2122_v60, 2  ;;  %v750_v39 = vld [vmem:[%s2496_s7] sm:$0xff] }
  0xb9   : > { %v2126_v62 = vsel %vm2028_vm3, %v668_v38, 0.0  ;;  %v2138_v1 = vsel %vm2095_vm1, %v727_v47, 0.0  ;;  %v663_v2 = vmul.f32 %v1819_v22, %v659_v58  ;;  %v722_v3 = vmul.f32 %v1819_v22, %v718_v59  ;;  %870 = vmatpush.msra.mxu2 %v750_v39  ;;  %978 = vmatpush.msra.mxu3 %v750_v39 }
  0xba   : > { %v548_v9 = vmax.f32 %v546_v54, 0.0  ;;  %v607_v10 = vmax.f32 %v605_v56, 0.0  ;;  %vm2576_vm3 = vcmp.le.s32.totalorder %v1798_v19, 8  ;;  %v2191_v42 = vmul.f32 %v1981_v63, %v2022_v14  ;;  %1081 = vmatpush.msra.mxu0 %v750_v39  ;;  %1184 = vmatpush.msra.mxu1 %v750_v39 }
  0xbb   : > { %vm2149_vm10 = vmand %vm2576_vm3, %vm673_vm11  ;;  %v665_v17 = vadd.f32 %v1864_v33, %v663_v2  ;;  %v724_v30 = vadd.f32 %v1864_v33, %v722_v3  ;;  %v2195_v35 = vmul.f32 %v1990_v4, %v2022_v14  ;;  %vm789_vm4 = vcmask 1045504  }
  0xbc   : > { %vm2579_vm11 = vmmov %vm2576_vm3  ;;  %v550_v23 = vmin.f32 %v548_v9, 6.0  ;;  %v609_v26 = vmin.f32 %v607_v10, 6.0  ;;  %v895_v10 = vmul.f32 %v1962_v57, %v2022_v14  ;;  %v2269_v44 = vmul.f32 %v2062_v29, %v2126_v62 }
  0xbd   : > { %vm2167_vm14 = vmand %vm2579_vm11, %vm732_vm8  ;;  %v667_v28 = vmax.f32 %v665_v17, 0.0  ;;  %v541_v32 = vpop.f32.mrf.mxu2  ;;  %v600_v34 = vpop.f32.mrf.mxu3  ;;  %v726_v37 = vmax.f32 %v724_v30, 0.0  ;;  %v2263_v17 = vld [vmem:[%s2493_s4 + $0x8] ss:$0 sm:$0xff]  ;;  %v901_v30 = vrot.slane %v2191_v42, 1  ;;  %v910_v14 = vrot.slane %v2195_v35, 2 }
  0xbe   : > { %vm2182_vm8 = vmand %vm2149_vm10, %vm679_vm12  ;;  %v2199_v43 = vsel %vm2115_vm6, %v550_v23, 0.0  ;;  %v2203_v15 = vsel %vm2132_vm5, %v609_v26, 0.0  ;;  %v545_v48 = vmul.f32 %v1819_v22, %v541_v32  ;;  %v604_v49 = vmul.f32 %v1819_v22, %v600_v34  ;;  %v769_v46 = vld [vmem:[#allocation2] sm:$0x3] }
  0xbf   : > { %vm2211_vm12 = vmand %vm2167_vm14, %vm738_vm15  ;;  %v669_v38 = vmin.f32 %v667_v28, 6.0  ;;  %v728_v22 = vmin.f32 %v726_v37, 6.0  ;;  %v775_v11 = vmul.f32 %v1981_v63, %v769_v46  ;;  %v786_v51 = vmul.f32 %v1990_v4, %v769_v46  ;;  %v796_v54 = vld [vmem:[#allocation2 + $0x18] sm:$0x3] }
  0xc0   : > { %vm2586_vm7 = vmmov %vm2576_vm3  ;;  %v547_v55 = vadd.f32 %v1864_v33, %v545_v48  ;;  %v606_v56 = vadd.f32 %v1864_v33, %v604_v49  ;;  %v802_v58 = vmul.f32 %v2047_v24, %v796_v54  ;;  %v812_v8 = vmul.f32 %v2050_v25, %v796_v54  ;;  %v894_v9 = vld [vmem:[#allocation2 + $0x18] sm:$0x3] }
  0xc1   : > { %vm2219_vm1 = vmand %vm2586_vm7, %vm555_vm13  ;;  %v683_v59 = vsel %vm2182_vm8, %v669_v38, 0.0  ;;  %v742_v0 = vsel %vm2211_vm12, %v728_v22, 0.0  ;;  %v780_v33 = vrot.slane %v775_v11, 1  ;;  %v791_v2 = vrot.slane %v786_v51, 2 }
  0xc2   : > { %vm2589_vm15 = vmmov %vm2576_vm3  ;;  %686 = vst [vmem:[#allocation2 + $0x48] sm:$0x3] %v683_v59  ;;  %v549_v19 = vmax.f32 %v547_v55, 0.0  ;;  %v608_v3 = vmax.f32 %v606_v56, 0.0  ;;  %v806_v26 = vrot.slane %v802_v58, 1  ;;  %v816_v28 = vrot.slane %v812_v8, 2 }
  0xc3   : > { %vm2231_vm13 = vmand %vm2589_vm15, %vm614_vm2  ;;  %vm2592_vm2 = vcmp.eq.s32.totalorder %v1895_v40, 1  ;;  %745 = vst [vmem:[#allocation2 + $0x40] sm:$0x3] %v742_v0  ;;  %v781_v40 = vsel %vm778_vm9, %v779_v20, %v780_v33  ;;  %v792_v20 = vsel %vm789_vm4, %v790_v21, %v791_v2  ;;  %v2277_v31 = vmul.f32 %v2080_v45, %v2199_v43 }
  0xc4   : > { %vm2244_vm6 = vmand %vm2219_vm1, %vm2592_vm2  ;;  %v551_v18 = vmin.f32 %v549_v19, 6.0  ;;  %v610_v7 = vmin.f32 %v608_v3, 6.0  ;;  %v783_v23 = vadd.f32 %v781_v40, %v2155_v13  ;;  %v898_v32 = vmul.f32 %v894_v9, %v1981_v63 }
  0xc5   : > { %vm2255_vm5 = vmand %vm2231_vm13, %vm620_vm0  ;;  %v907_v13 = vmul.f32 %v894_v9, %v1990_v4  ;;  %v823_v52 = vmul.f32 %v2062_v29, %v2199_v43  ;;  %v836_v21 = vmul.f32 %v2263_v17, %v2199_v43  ;;  %v2291_v35 = vmul.f32 %v2080_v45, %v2126_v62 }
  0xc6   : > { %v565_v34 = vsel %vm2244_vm6, %v551_v18, 0.0  ;;  %v624_v37 = vsel %vm2255_vm5, %v610_v7, 0.0  ;;  %v794_v39 = vadd.f32 %v792_v20, %v783_v23  ;;  %v902_v42 = vrot.slane %v898_v32, 1 }
  0xc7   : > { %568 = vst [vmem:[#allocation2 + $0x20] sm:$0x3] %v565_v34  ;;  %v911_v49 = vrot.slane %v907_v13, 2  ;;  %v919_v50 = vmul.f32 %v2047_v24, %v2199_v43  ;;  %v928_v46 = vmul.f32 %v2050_v25, %v2199_v43  ;;  %v807_v38 = vsel %vm778_vm9, %v805_v61, %v806_v26 }
  0xc8   : > { %627 = vst [vmem:[#allocation2 + $0x38] sm:$0x3] %v624_v37  ;;  %v799_v48 = vadd.f32 %v2159_v16, %v794_v39  ;;  %v903_v47 = vsel %vm778_vm9, %v901_v30, %v902_v42  ;;  %v2304_v22 = vmul.f32 %v2080_v45, %v2203_v15  ;;  %v2308_v16 = vmul.f32 %v2263_v17, %v2203_v15 }
  0xc9   : > { %v817_v51 = vsel %vm789_vm4, %v815_v27, %v816_v28  ;;  %v830_v54 = vrot.slane %v2277_v31, 1  ;;  %v905_v53 = vadd.f32 %v903_v47, %v895_v10  ;;  %v840_v55 = vrot.slane %v836_v21, 2 }
  0xca   : > { %v809_v11 = vadd.f32 %v807_v38, %v799_v48  ;;  %v912_v61 = vsel %vm789_vm4, %v910_v14, %v911_v49  ;;  %v917_v56 = vmul.f32 %v1993_v6, %v2199_v43  ;;  %v939_v36 = vmul.f32 %v2062_v29, %v2203_v15  ;;  %v1041_v38 = vld [vmem:[#allocation2 + $0x48] sm:$0x3] }
  0xcb   : > { %v923_v59 = vrot.slane %v919_v50, 1  ;;  %v932_v0 = vrot.slane %v928_v46, 2  ;;  %v945_v33 = vrot.slane %v2304_v22, 1  ;;  %v914_v60 = vadd.f32 %v912_v61, %v905_v53 }
  0xcc   : > { %v819_v58 = vadd.f32 %v817_v51, %v809_v11  ;;  %v954_v27 = vrot.slane %v2308_v16, 2  ;;  %v998_v2 = vmul.f32 %v1962_v57, %v2199_v43  ;;  %v1000_v19 = vmul.f32 %v1981_v63, %v2199_v43  ;;  %v2349_v16 = vld [vmem:[%s2494_s5] ss:$0 sm:$0xff] }
  0xcd   : > { %v1009_v9 = vmul.f32 %v1990_v4, %v2199_v43  ;;  %v1020_v10 = vmul.f32 %v1993_v6, %v2203_v15  ;;  %v1022_v12 = vmul.f32 %v2047_v24, %v2203_v15  ;;  %v2333_v40 = vmul.f32 %v2050_v25, %v2203_v15 }
  0xce   : > { %v821_v41 = vld [vmem:[#allocation2 + $0x20] sm:$0x3]  ;;  %v824_v43 = vadd.f32 %v823_v52, %v819_v58  ;;  %v918_v39 = vadd.f32 %v917_v56, %v914_v60  ;;  %v1004_v13 = vrot.slane %v1000_v19, 1  ;;  %v1045_v19 = vmul.f32 %v1041_v38, %v2080_v45 }
  0xcf   : > { %v916_v3 = vld [vmem:[#allocation2 + $0x20] sm:$0x3]  ;;  %v827_v30 = vmul.f32 %v2080_v45, %v821_v41  ;;  %v837_v14 = vmul.f32 %v2263_v17, %v821_v41  ;;  %v938_v23 = vld [vmem:[#allocation2 + $0x38] sm:$0x3]  ;;  %v1013_v61 = vrot.slane %v1009_v9, 2  ;;  %vm2597_vm0 = vcmask 130048  }
  0xd0   : > { %v997_v8 = vld [vmem:[#allocation2 + $0x20] sm:$0x3]  ;;  %v920_v18 = vmul.f32 %v916_v3, %v2047_v24  ;;  %v929_v7 = vmul.f32 %v916_v3, %v2050_v25  ;;  %v942_v26 = vmul.f32 %v938_v23, %v2080_v45  ;;  %v951_v20 = vmul.f32 %v2263_v17, %v938_v23  ;;  %v1019_v48 = vld [vmem:[#allocation2 + $0x38] sm:$0x3]  ;;  %vm2598_vm3 = vmmov %vm2597_vm0 }
  0xd1   : > { %v1001_v28 = vmul.f32 %v997_v8, %v1981_v63  ;;  %v831_v31 = vrot.slane %v827_v30, 1  ;;  %v841_v32 = vrot.slane %v837_v14, 2  ;;  %v1010_v42 = vmul.f32 %v997_v8, %v1990_v4  ;;  %vm2599_vm10 = vmmov %vm2597_vm0 }
  0xd2   : > { %v924_v34 = vrot.slane %v920_v18, 1  ;;  %v933_v37 = vrot.slane %v929_v7, 2  ;;  %v946_v50 = vrot.slane %v942_v26, 1  ;;  %v955_v46 = vrot.slane %v951_v20, 2  ;;  %vm2602_vm11 = vmmov %vm2597_vm0 }
  0xd3   : > { %v1005_v21 = vrot.slane %v1001_v28, 1  ;;  %v832_v49 = vsel %vm778_vm9, %v830_v54, %v831_v31  ;;  %v842_v22 = vsel %vm789_vm4, %v840_v55, %v841_v32  ;;  %v1014_v54 = vrot.slane %v1010_v42, 2  ;;  %v1100_v32 = vld [vmem:[#allocation2 + $0x38] sm:$0x3] }
  0xd4   : > { %v925_v52 = vsel %vm778_vm9, %v923_v59, %v924_v34  ;;  %v834_v47 = vadd.f32 %v832_v49, %v824_v43  ;;  %v934_v51 = vsel %vm789_vm4, %v932_v0, %v933_v37  ;;  %v1023_v56 = vmul.f32 %v1019_v48, %v2047_v24  ;;  %v2357_v59 = vld [vmem:[%s2495_s6] ss:$0 sm:$0xff] }
  0xd5   : > { %v927_v11 = vadd.f32 %v925_v52, %v918_v39  ;;  %v1006_v53 = vsel %vm778_vm9, %v1004_v13, %v1005_v21  ;;  %v1015_v41 = vsel %vm789_vm4, %v1013_v61, %v1014_v54  ;;  %v1032_v0 = vmul.f32 %v1019_v48, %v2050_v25  ;;  %v1122_v48 = vld [vmem:[#allocation2 + $0x48] sm:$0x3] }
  0xd6   : > { %v844_v58 = vadd.f32 %v842_v22, %v834_v47  ;;  %v1008_v60 = vadd.f32 %v1006_v53, %v998_v2  ;;  %v1027_v3 = vrot.slane %v1023_v56, 1  ;;  %v1053_v8 = vmul.f32 %v2263_v17, %v2126_v62 }
  0xd7   : > { %v936_v55 = vadd.f32 %v934_v51, %v927_v11  ;;  %v1054_v18 = vmul.f32 %v2263_v17, %v1041_v38  ;;  %v947_v7 = vsel %vm778_vm9, %v945_v33, %v946_v50  ;;  %v956_v2 = vsel %vm789_vm4, %v954_v27, %v955_v46 }
  0xd8   : > { %v848_v9 = vmul.f32 %v2349_v16, %v844_v58  ;;  %v1017_v14 = vadd.f32 %v1015_v41, %v1008_v60  ;;  %v1026_v23 = vrot.slane %v1022_v12, 1  ;;  %v1036_v43 = vrot.slane %v1032_v0, 2 }
  0xd9   : > { %v940_v30 = vadd.f32 %v939_v36, %v936_v55  ;;  %v1035_v31 = vrot.slane %v2333_v40, 2  ;;  %v1048_v36 = vrot.slane %v2291_v35, 1  ;;  %v1049_v37 = vrot.slane %v1045_v19, 1  ;;  %v1144_v19 = vld [vmem:[#allocation2 + $0x40] sm:$0x3] }
  0xda   : > { %v852_v26 = vadd.f32 %v2357_v59, %v848_v9  ;;  %v1021_v28 = vadd.f32 %v1020_v10, %v1017_v14  ;;  %v1028_v34 = vsel %vm778_vm9, %v1026_v23, %v1027_v3  ;;  %v1103_v39 = vmul.f32 %v1981_v63, %v2203_v15 }
  0xdb   : > { %v949_v20 = vadd.f32 %v947_v7, %v940_v30  ;;  %v1057_v12 = vrot.slane %v1053_v8, 2  ;;  %v1037_v21 = vsel %vm789_vm4, %v1035_v31, %v1036_v43  ;;  %v1104_v42 = vmul.f32 %v1100_v32, %v1981_v63 }
  0xdc   : > { %v853_v33 = vmax.f32 %v852_v26, 0.0  ;;  %v1030_v27 = vadd.f32 %v1028_v34, %v1021_v28  ;;  %v1112_v10 = vmul.f32 %v1990_v4, %v2203_v15  ;;  %v1113_v40 = vmul.f32 %v1100_v32, %v1990_v4 }
  0xdd   : > { %v958_v13 = vadd.f32 %v956_v2, %v949_v20  ;;  %v1058_v50 = vrot.slane %v1054_v18, 2  ;;  %v1050_v46 = vsel %vm778_vm9, %v1048_v36, %v1049_v37  ;;  %v1107_v38 = vrot.slane %v1103_v39, 1 }
  0xde   : > { %v854_v49 = vmin.f32 %v853_v33, 6.0  ;;  %v1039_v52 = vadd.f32 %v1037_v21, %v1030_v27  ;;  %v1108_v47 = vrot.slane %v1104_v42, 1  ;;  %v1117_v22 = vrot.slane %v1113_v40, 2  ;;  %v1465_v40 = vld [vmem:[%s2497_s8] ss:$0 sm:$0xff] }
  0xdf   : > { %v959_v35 = vmul.f32 %v2349_v16, %v958_v13  ;;  %v1101_v51 = vmul.f32 %v1962_v57, %v2203_v15  ;;  %v1126_v4 = vmul.f32 %v1122_v48, %v2047_v24  ;;  %v1116_v61 = vrot.slane %v1112_v10, 2  ;;  %v1360_v10 = vld [vmem:[%s1703_s23 + $0x18] sm:$0x3] }
  0xe0   : > { %871 = vmatmul.f32.vlgmr.msra.gmra.mxu2 %v854_v49  ;;  %v1043_v63 = vadd.f32 %v2269_v44, %v1039_v52  ;;  %v1109_v53 = vsel %vm778_vm9, %v1107_v38, %v1108_v47  ;;  %v1125_v54 = vmul.f32 %v2047_v24, %v2126_v62  ;;  %v1135_v56 = vmul.f32 %v1122_v48, %v2050_v25  ;;  %v1361_v52 = vld [vmem:[%s1703_s23 + $0x20] sm:$0xff]  ;;  %v1364_v47 = vld [vmem:[%s1703_s23 + $0x30] sm:$0xff] }
  0xe1   : > { %v960_v11 = vadd.f32 %v2357_v59, %v959_v35  ;;  %v1111_v60 = vadd.f32 %v1109_v53, %v1101_v51  ;;  %v1059_v41 = vsel %vm789_vm4, %v1057_v12, %v1058_v50  ;;  %v1118_v44 = vsel %vm789_vm4, %v1116_v61, %v1117_v22  ;;  %v1362_v50 = vld [vmem:[%s1703_s23 + $0x28] sm:$0x3]  ;;  %v1365_v22 = vld [vmem:[%s1703_s23 + $0x38] sm:$0x3] }
  0xe2   : > { %v1052_v55 = vadd.f32 %v1050_v46, %v1043_v63  ;;  %v1130_v3 = vrot.slane %v1126_v4, 1  ;;  %v1134_v57 = vmul.f32 %v2050_v25, %v2126_v62  ;;  %v1123_v24 = vmul.f32 %v1993_v6, %v2126_v62 }
  0xe3   : > { %v961_v58 = vmax.f32 %v960_v11, 0.0  ;;  %v1120_v8 = vadd.f32 %v1118_v44, %v1111_v60  ;;  %v1129_v9 = vrot.slane %v1125_v54, 1  ;;  %v1139_v30 = vrot.slane %v1135_v56, 2 }
  0xe4   : > { %v1061_v0 = vadd.f32 %v1059_v41, %v1052_v55  ;;  %v1147_v14 = vmul.f32 %v2080_v45, %v2138_v1  ;;  %v1148_v18 = vmul.f32 %v1144_v19, %v2080_v45  ;;  %v1138_v25 = vrot.slane %v1134_v57, 2  ;;  %v1368_v57 = vld [vmem:[%s1703_s23 + $0x48] sm:$0x3] }
  0xe5   : > { %v962_v15 = vmin.f32 %v961_v58, 6.0  ;;  %v1124_v2 = vadd.f32 %v1123_v24, %v1120_v8  ;;  %v1131_v23 = vsel %vm778_vm9, %v1129_v9, %v1130_v3  ;;  %v1156_v43 = vmul.f32 %v2263_v17, %v2138_v1  ;;  %v1367_v3 = vld [vmem:[%s1703_s23 + $0x40] sm:$0xff]  ;;  %s1203_s23 = scalar_lea.sflag [#allocation4], %s364_s0 }
  0xe6   : > { %v1062_v7 = vmul.f32 %v2349_v16, %v1061_v0  ;;  %v1157_v26 = vmul.f32 %v2263_v17, %v1144_v19  ;;  %v1140_v20 = vsel %vm789_vm4, %v1138_v25, %v1139_v30  ;;  %v1151_v28 = vrot.slane %v1147_v14, 1 }
  0xe7   : > { %979 = vmatmul.f32.vlgmr.msra.gmra.mxu3 %v962_v15  ;;  %v1133_v62 = vadd.f32 %v1131_v23, %v1124_v2  ;;  %v1152_v31 = vrot.slane %v1148_v18, 1  ;;  %v1145_v34 = vmul.f32 %v2062_v29, %v2138_v1  ;;  %v1160_v36 = vrot.slane %v1156_v43, 2 }
  0xe8   : > { %v1063_v6 = vadd.f32 %v2357_v59, %v1062_v7  ;;  %v1161_v37 = vrot.slane %v1157_v26, 2  ;;  %v887_v48 = vrot.slane %v1711_v5, 1  ;;  %v888_v49 = vrot.slane %v1360_v10, 1 }
  0xe9   : > { %v1142_v32 = vadd.f32 %v1140_v20, %v1133_v62  ;;  %v1153_v17 = vsel %vm778_vm9, %v1151_v28, %v1152_v31  ;;  %v989_v11 = vrot.slane %v1361_v52, 1  ;;  %v990_v63 = vrot.slane %v1362_v50, 1 }
  0xea   : > { %v1064_v45 = vmax.f32 %v1063_v6, 0.0  ;;  %v1162_v27 = vsel %vm789_vm4, %v1160_v36, %v1161_v37  ;;  %v889_v46 = vsel %vm778_vm9, %v887_v48, %v888_v49  ;;  %v1092_v4 = vrot.slane %v1364_v47, 1 }
  0xeb   : > { %v1146_v33 = vadd.f32 %v1145_v34, %v1142_v32  ;;  %v1093_v53 = vrot.slane %v1365_v22, 1  ;;  %v991_v54 = vsel %vm778_vm9, %v989_v11, %v990_v63  ;;  %v1195_v15 = vrot.slane %v1367_v3, 1 }
  0xec   : > { %v1065_v39 = vmin.f32 %v1064_v45, 6.0  ;;  %v1196_v0 = vrot.slane %v1368_v57, 1 }
  0xed   : > { %v1155_v13 = vadd.f32 %v1153_v17, %v1146_v33  ;;  %v1094_v60 = vsel %vm778_vm9, %v1092_v4, %v1093_v53 }
  0xee   : > { %1082 = vmatmul.f32.vlgmr.msra.gmra.mxu0 %v1065_v39  ;;  %v1197_v9 = vsel %vm778_vm9, %v1195_v15, %v1196_v0 }
  0xef   : > { %v1164_v12 = vadd.f32 %v1162_v27, %v1155_v13 }
  0xf1   : > { %v1165_v21 = vmul.f32 %v2349_v16, %v1164_v12  ;;  %v1466_v16 = vld [vmem:[%s2498_s9] ss:$0 sm:$0xff] }
  0xf3   : > { %v1166_v42 = vadd.f32 %v2357_v59, %v1165_v21 }
  0xf5   : > { %v1167_v29 = vmax.f32 %v1166_v42, 0.0 }
  0xf7   : > { %v1168_v1 = vmin.f32 %v1167_v29, 6.0 }
  0xf9   : > { %1185 = vmatmul.f32.vlgmr.msra.gmra.mxu1 %v1168_v1 }
 0x163   : > { %v872_v35 = vpop.f32.mrf.mxu2 }
 0x164   : > { %v878_v59 = vmul.f32 %v1465_v40, %v872_v35 }
 0x166   : > { %v882_v38 = vadd.f32 %v1466_v16, %v878_v59 }
 0x168   : > { %v891_v5 = vadd.f32 %v889_v46, %v882_v38 }
 0x16a   : > { %v980_v51 = vpop.f32.mrf.mxu3  ;;  %892 = vst.msk [vmem:[%s2428_s20] sm:$0xff] %vm2597_vm0, %v891_v5 }
 0x16b   : > { %v983_v61 = vmul.f32 %v1465_v40, %v980_v51  ;;  %v1083_v56 = vpop.f32.mrf.mxu0 }
 0x16c   : > { %v1086_v55 = vmul.f32 %v1465_v40, %v1083_v56 }
 0x16d   : > { %v984_v58 = vadd.f32 %v1466_v16, %v983_v61 }
 0x16e   : > { %v1087_v41 = vadd.f32 %v1466_v16, %v1086_v55 }
 0x16f   : > { %v993_v19 = vadd.f32 %v991_v54, %v984_v58 }
 0x170   : > { %v1096_v44 = vadd.f32 %v1094_v60, %v1087_v41 }
 0x171   : > { %1363 = vst.msk [vmem:[%s2428_s20 + $0x8] sm:$0xff] %vm2598_vm3, %v993_v19 }
 0x172   : > { %1366 = vst.msk [vmem:[%s2428_s20 + $0x10] sm:$0xff] %vm2599_vm10, %v1096_v44 }
 0x176   : > { %v1186_v8 = vpop.f32.mrf.mxu1 }
 0x177   : > { %v1189_v24 = vmul.f32 %v1465_v40, %v1186_v8 }
 0x179   : > { %v1190_v30 = vadd.f32 %v1466_v16, %v1189_v24 }
 0x17b   : > { %v1199_v14 = vadd.f32 %v1197_v9, %v1190_v30 }
 0x17d   : > { %1369 = vst.msk [vmem:[%s2428_s20 + $0x18] sm:$0xff] %vm2602_vm11, %v1199_v14 }
 0x17e   : > { %1494 = shalt.err (!%p1491_p6)
}
 0x17f   : > { %s1563_s0 = smov 128   ;;  %s1564_s19 = smov 8  }
 0x180   : > { %1387 = dma.vmem_to_hbm [thread:$0]  (%p1671_p3), %s1218_s27, 512, %s1220_s22, %s1203_s23, %s1563_s0, %s1563_s0, %s1564_s19  }
 0x181 PF: > { %s2603_s15 = sld [smem:[#allocation10_spill]] }
 0x182   : > { %s2604_s20 = sld [smem:[#allocation6_spill]] }
 0x187   : > { %p1393_p7 = scmp.ge.s32.totalorder %s2603_s15, 2 }
 0x188   : > { %s1234_s1 = sand.u32 1, %s2604_s20  }
 0x189   : > { %p1390_p9 = pnand %p1393_p7, %p1680_p8  ;;  %s1235_s18 = scalar_lea.sflag [#allocation4], %s1234_s1 }
 0x18b   : > { %p1391_p10 = pneg %p1390_p9 }
 0x18d   : > { %1528 = dma.done.wait (%p1391_p10), %s1235_s18, 512  }
 0x18e   : > { %1530 = vsyncadd (%p1391_p10), %s1235_s18, 4294966784  ;;  %s23_s20 = sadd.s32 1, %s2603_s15   ;;  %s2606_s11 = sld [smem:[#allocation7_spill]] }
 0x18f   : > { %p20_p11 = scmp.ge.s32.totalorder %s23_s20, 6   ;;  %s2607_s15 = sld [smem:[#allocation15_spill]] }
 0x190   : > { %s2608_s16 = sld [smem:[#allocation8_spill]]  ;;  %s2612_s13 = smov %s1537_s14 }
 0x191   : > { %s2609_s17 = sld [smem:[#allocation9_spill]]  ;;  %22 = sbr.rel (!%p20_p11) target bundleno = 9 (0x9), region = 109 }
 0x192   : > { %s2610_s18 = sld [smem:[#allocation11_spill]] }
 0x193   : > { %s2611_s19 = sld [smem:[#allocation13_spill]] }
 0x194   : > { %s2613_s14 = smov %s2606_s11 }
 0x196   :  { %1241 = vsyncpa [#allocation4], 1 }
 0x197   :  { %1243 = vsyncpa [#allocation4 + $0x1], 1 }

</bundles_post_ra>
